<compile_context>
chip_gen: v5e
topology: v5e:2x2
jax: 0.10.0
libtpu: 0.0.40
codegen_flags: <defaults>
</compile_context>

<pallas_src>
import functools

import jax
import jax.numpy as jnp
from jax import lax
from jax.experimental import pallas as pl
from jax.experimental.pallas import tpu as pltpu


# ----------------------------------------------------------------------------
# Helpers: VMEM-aware tile selection
# ----------------------------------------------------------------------------
def _round_up(x, m):
    return ((x + m - 1) // m) * m


def _vmem_capacity_bytes():
    """Physical VMEM of the current chip; conservative fallback if unknown."""
    try:
        info = pltpu.get_tpu_info()
        cap = int(getattr(info, "vmem_capacity_bytes", 0))
        if cap > 0:
            return cap
    except Exception:
        pass
    return 64 * 1024 * 1024  # v7x per-TensorCore figure (most restrictive)


def _estimate_vmem_bytes(tile_n, C, out_dim, Nk, Nv, itemsize, single_buffer):
    """Rough per-step VMEM footprint of the kernel for a given query tile."""
    wbuf = 1 if single_buffer else 2
    const = wbuf * (Nk * C + Nv * C + C * C + C * out_dim + out_dim) * itemsize
    x_blocks = 2 * tile_n * C * itemsize           # double-buffered query tile
    o_blocks = 2 * tile_n * out_dim * itemsize     # double-buffered output tile
    ctx = tile_n * C * itemsize                    # per-head context scratch
    # Transient f32 intermediates: Q projection, score/prob block, epilogue.
    transient = (tile_n * C * 4
                 + 2 * tile_n * max(Nk, 128) * 4
                 + tile_n * out_dim * 4)
    return const + x_blocks + o_blocks + ctx + transient


def _pick_tile_n(N, C, out_dim, Nk, Nv, itemsize, vmem_cap, single_buffer):
    """Largest query tile whose estimated footprint fits ~60% of VMEM."""
    budget = int(0.6 * vmem_cap)   # headroom for compiler scratch / spills
    tile = 128
    for cand in (512, 384, 256, 128):
        if _estimate_vmem_bytes(cand, C, out_dim, Nk, Nv,
                                itemsize, single_buffer) <= budget:
            tile = cand
            break
    # Short sequences: never tile wider than the (8-aligned) sequence itself.
    return max(8, min(tile, _round_up(N, 8)))


# ----------------------------------------------------------------------------
# Fused kernel: Q projection + multi-head attention + output projection.
# Grid: (batch, n_query_tiles) -- both axes fully parallel (no cross-step
# state), so they can be megacore-sharded on v7x.
# ----------------------------------------------------------------------------
def _cross_attn_kernel(
    x_ref,    # (1, tile_n, C)     query activations for this tile
    kp_ref,   # (1, Nk, C)         projected keys for this batch element
    vp_ref,   # (1, Nv, C)         projected values for this batch element
    wq_ref,   # (C, C)
    wp_ref,   # (C, out_dim)
    bp_ref,   # (1, out_dim)
    o_ref,    # (1, tile_n, out_dim)
    ctx_ref,  # VMEM scratch (tile_n, C): per-head context assembly
    *,
    num_heads,
    scale,
):
    in_dtype = x_ref.dtype
    x = x_ref[0]                                                     # (tile_n, C)

    # Full-width, lane-dense Q projection on the MXU; softmax scale folded in.
    q = (
        jnp.dot(x, wq_ref[...], preferred_element_type=jnp.float32) * scale
    ).astype(in_dtype)                                               # (tile_n, C)
    k = kp_ref[0]                                                    # (Nk, C)
    v = vp_ref[0]                                                    # (Nv, C)

    C = q.shape[-1]
    head_dim = C // num_heads

    # Per-head attention (unrolled at trace time; all 2-D MXU matmuls).
    for h in range(num_heads):
        lo = h * head_dim
        qh = q[:, lo:lo + head_dim]                                  # (tile_n, hd)
        kh = k[:, lo:lo + head_dim]                                  # (Nk, hd)
        vh = v[:, lo:lo + head_dim]                                  # (Nv, hd)

        # Scores: contract the last dim of both operands (no explicit kh.T).
        s = lax.dot_general(
            qh, kh, (((1,), (1,)), ((), ())),
            preferred_element_type=jnp.float32,
        )                                                            # (tile_n, Nk)

        # Numerically-stable softmax in f32; divide -> EUP approx reciprocal.
        s = s - jnp.max(s, axis=-1, keepdims=True)
        p = jnp.exp(s)
        p = p * pl.reciprocal(jnp.sum(p, axis=-1, keepdims=True), approx=True)

        # Store this head's context directly into the scratch slab (store
        # slot) instead of a lane-shuffling concatenate.
        ctx_ref[:, lo:lo + head_dim] = jnp.dot(
            p.astype(vh.dtype), vh, preferred_element_type=jnp.float32
        ).astype(ctx_ref.dtype)

    # Output projection as one lane-dense (tile_n, C) x (C, out_dim) matmul.
    y = jnp.dot(ctx_ref[...], wp_ref[...],
                preferred_element_type=jnp.float32) + bp_ref[...]
    o_ref[0] = y.astype(o_ref.dtype)


# ----------------------------------------------------------------------------
# Wrapper
# ----------------------------------------------------------------------------
def cross_attention(x, k_in, v_in, params, num_heads, *, tile_n=None):
    B, N, C = x.shape
    Nk = k_in.shape[1]
    Nv = v_in.shape[1]
    head_dim = C // num_heads
    scale = head_dim ** (-0.5)

    wq, wk, wv = params["wq"], params["wk"], params["wv"]
    w_proj, b_proj = params["w_proj"], params["b_proj"]
    out_dim = w_proj.shape[1]
    b_proj_2d = b_proj.reshape(1, out_dim)

    # K/V projections hoisted out of the kernel (plain XLA matmuls): removes
    # raw K/V, wk, wv and the projected-K/V scratch from the kernel's VMEM
    # footprint and makes every grid step independent.
    k_proj = jnp.einsum("bnc,cd->bnd", k_in, wk).astype(x.dtype)
    v_proj = jnp.einsum("bnc,cd->bnd", v_in, wv).astype(x.dtype)

    itemsize = jnp.dtype(x.dtype).itemsize
    vmem_cap = _vmem_capacity_bytes()
    if tile_n is None:
        tile_n = _pick_tile_n(N, C, out_dim, Nk, Nv, itemsize, vmem_cap, True)
    tile_n = max(8, min(int(tile_n), _round_up(N, 8)))

    # Pad the query sequence to a multiple of tile_n (instead of degrading to
    # a single full-N tile when N % tile_n != 0); padded rows are sliced off.
    N_pad = _round_up(N, tile_n)
    x_pad = x if N_pad == N else jnp.pad(x, ((0, 0), (0, N_pad - N), (0, 0)))
    n_tiles = N_pad // tile_n

    # Explicit scoped-VMEM limit derived from the footprint estimate (the
    # default scoped limit -- 16 MiB v5e / 32 MiB v6e,v7x -- is too small at
    # production C / Nk).
    vmem_limit = int(min(
        0.9 * vmem_cap,
        max(32 * 1024 * 1024,
            2 * _estimate_vmem_bytes(tile_n, C, out_dim, Nk, Nv, itemsize, True)),
    ))

    kernel = functools.partial(
        _cross_attn_kernel, num_heads=num_heads, scale=scale
    )

    def build(single_buffer):
        def const_spec(shape, index_map):
            # Constant-index inputs: single-buffer to halve their VMEM cost.
            if single_buffer:
                return pl.BlockSpec(shape, index_map,
                                    pipeline_mode=pl.Buffered(1))
            return pl.BlockSpec(shape, index_map)

        return pl.pallas_call(
            kernel,
            out_shape=jax.ShapeDtypeStruct((B, N_pad, out_dim), x.dtype),
            grid_spec=pltpu.PrefetchScalarGridSpec(
                num_scalar_prefetch=0,
                grid=(B, n_tiles),
                in_specs=[
                    # Query activations: tiled over (batch, q-tile).
                    pl.BlockSpec((1, tile_n, C), lambda b, i: (b, i, 0)),
                    # Projected K / V: full sequence per batch, constant over i.
                    const_spec((1, Nk, C), lambda b, i: (b, 0, 0)),
                    const_spec((1, Nv, C), lambda b, i: (b, 0, 0)),
                    # Q-projection weight, output-projection weight + bias.
                    const_spec((C, C), lambda b, i: (0, 0)),
                    const_spec((C, out_dim), lambda b, i: (0, 0)),
                    const_spec((1, out_dim), lambda b, i: (0, 0)),
                ],
                # Output written directly in final (B, N_pad, out_dim) layout.
                out_specs=pl.BlockSpec((1, tile_n, out_dim),
                                       lambda b, i: (b, i, 0)),
                scratch_shapes=[
                    pltpu.VMEM((tile_n, C), x.dtype),   # per-head ctx assembly
                ],
            ),
            compiler_params=pltpu.CompilerParams(
                # No cross-step scratch carry -> both grid axes are parallel
                # (lets v7x megacore shard either axis; no-op on v5e/v6e).
                dimension_semantics=("parallel", "parallel"),
                vmem_limit_bytes=vmem_limit,
            ),
        )

    args = (x_pad, k_proj, v_proj, wq, w_proj, b_proj_2d)
    try:
        out = jax.block_until_ready(build(True)(*args))
    except Exception:
        # Fallback for Pallas builds that reject pipeline_mode=pl.Buffered(1).
        out = jax.block_until_ready(build(False)(*args))

    return out if N_pad == N else out[:, :N, :]


# ----------------------------------------------------------------------------
# Pure-JAX reference (mirrors the PyTorch forward exactly)
# ----------------------------------------------------------------------------
def cross_attention_ref(x, k_in, v_in, params, num_heads):
    B, N, C = x.shape
    head_dim = C // num_heads
    scale = head_dim ** (-0.5)
    q = x @ params["wq"]
    k = k_in @ params["wk"]
    v = v_in @ params["wv"]
    q = q.reshape(B, N, num_heads, head_dim).transpose(0, 2, 1, 3)
    k = k.reshape(B, -1, num_heads, head_dim).transpose(0, 2, 1, 3)
    v = v.reshape(B, -1, num_heads, head_dim).transpose(0, 2, 1, 3)
    attn = (q * scale) @ k.transpose(0, 1, 3, 2)
    attn = jax.nn.softmax(attn, axis=-1)
    o = (attn @ v).transpose(0, 2, 1, 3).reshape(B, N, -1)
    return o @ params["w_proj"] + params["b_proj"]


if __name__ == "__main__":
    key = jax.random.PRNGKey(0)
    B, N, C = 2, 8, 32          # batch, query length, dim
    Nk = Nv = 16                # key/value length
    num_heads = 4               # head_dim = 8
    out_dim = C

    ks = jax.random.split(key, 8)
    x = jax.random.normal(ks[0], (B, N, C), dtype=jnp.float32)
    k_in = jax.random.normal(ks[1], (B, Nk, C), dtype=jnp.float32)
    v_in = jax.random.normal(ks[2], (B, Nv, C), dtype=jnp.float32)

    # Deterministic parameter init (qkv_bias=False -> q/k/v have no bias).
    params = {
        "wq": jax.random.normal(ks[3], (C, C), dtype=jnp.float32) * 0.05,
        "wk": jax.random.normal(ks[4], (C, C), dtype=jnp.float32) * 0.05,
        "wv": jax.random.normal(ks[5], (C, C), dtype=jnp.float32) * 0.05,
        "w_proj": jax.random.normal(ks[6], (C, out_dim), dtype=jnp.float32) * 0.05,
        "b_proj": jax.random.normal(ks[7], (out_dim,), dtype=jnp.float32) * 0.05,
    }

    out = cross_attention(x, k_in, v_in, params, num_heads)
    out = jax.block_until_ready(out)

    ref = cross_attention_ref(x, k_in, v_in, params, num_heads)
    assert out.shape == (B, N, out_dim)
    # Tolerance covers the EUP approximate reciprocal in the softmax.
    assert jnp.allclose(out, ref, atol=2e-3, rtol=2e-3), "mismatch vs reference"

    print("KERNEL_OK")
</pallas_src>

<mosaic_0001>
module attributes {stable_mosaic.version = 11 : i64} {
  func.func @_cross_attn_kernel(%arg0: i32, %arg1: i32, %arg2: memref<1x8x32xf32, #tpu.memory_space<vmem>>, %arg3: memref<1x16x32xf32, #tpu.memory_space<vmem>>, %arg4: memref<1x16x32xf32, #tpu.memory_space<vmem>>, %arg5: memref<32x32xf32, #tpu.memory_space<vmem>>, %arg6: memref<32x32xf32, #tpu.memory_space<vmem>>, %arg7: memref<1x32xf32, #tpu.memory_space<vmem>>, %arg8: memref<1x8x32xf32, #tpu.memory_space<vmem>>, %arg9: memref<8x32xf32, #tpu.memory_space<vmem>>) attributes {dimension_semantics = [#tpu.dimension_semantics<parallel>, #tpu.dimension_semantics<parallel>], iteration_bounds = array<i64: 2, 1>, scalar_prefetch = 0 : i64, scratch_operands = 1 : i64, tpu.core_type = #tpu.core_type<tc>, window_params = [{transform_indices = @transform_0, window_bounds = array<i64: 1, 8, 32>}, {pipeline_mode = #tpu.pipeline_mode<synchronous>, transform_indices = @transform_1, window_bounds = array<i64: 1, 16, 32>}, {pipeline_mode = #tpu.pipeline_mode<synchronous>, transform_indices = @transform_2, window_bounds = array<i64: 1, 16, 32>}, {pipeline_mode = #tpu.pipeline_mode<synchronous>, transform_indices = @transform_3, window_bounds = array<i64: 32, 32>}, {pipeline_mode = #tpu.pipeline_mode<synchronous>, transform_indices = @transform_4, window_bounds = array<i64: 32, 32>}, {pipeline_mode = #tpu.pipeline_mode<synchronous>, transform_indices = @transform_5, window_bounds = array<i64: 1, 32>}, {transform_indices = @transform_6, window_bounds = array<i64: 1, 8, 32>}]} {
    %c0 = arith.constant 0 : index
    %c0_0 = arith.constant 0 : index
    %c0_1 = arith.constant 0 : index
    %0 = vector.load %arg2[%c0, %c0_0, %c0_1] : memref<1x8x32xf32, #tpu.memory_space<vmem>>, vector<1x8x32xf32>
    %1 = vector.shape_cast %0 : vector<1x8x32xf32> to vector<8x32xf32>
    %c0_2 = arith.constant 0 : index
    %c0_3 = arith.constant 0 : index
    %2 = vector.load %arg5[%c0_2, %c0_3] : memref<32x32xf32, #tpu.memory_space<vmem>>, vector<32x32xf32>
    %cst = arith.constant dense<0.000000e+00> : vector<8x32xf32>
    %3 = tpu.matmul %1, %2, %cst {dimension_numbers = #tpu.dot_dimension_numbers<[1], [0], [0], [1], [0, 0, 1, 1], [], []>} : vector<8x32xf32>, vector<32x32xf32>, vector<8x32xf32> -> vector<8x32xf32>
    %cst_4 = arith.constant 0.353553385 : f32
    %4 = vector.broadcast %cst_4 : f32 to vector<8x32xf32>
    %5 = arith.mulf %3, %4 : vector<8x32xf32>
    %c0_5 = arith.constant 0 : index
    %c0_6 = arith.constant 0 : index
    %c0_7 = arith.constant 0 : index
    %6 = vector.load %arg3[%c0_5, %c0_6, %c0_7] : memref<1x16x32xf32, #tpu.memory_space<vmem>>, vector<1x16x32xf32>
    %7 = vector.shape_cast %6 : vector<1x16x32xf32> to vector<16x32xf32>
    %c0_8 = arith.constant 0 : index
    %c0_9 = arith.constant 0 : index
    %c0_10 = arith.constant 0 : index
    %8 = vector.load %arg4[%c0_8, %c0_9, %c0_10] : memref<1x16x32xf32, #tpu.memory_space<vmem>>, vector<1x16x32xf32>
    %9 = vector.shape_cast %8 : vector<1x16x32xf32> to vector<16x32xf32>
    %10 = vector.extract_strided_slice %5 {offsets = [0, 0], sizes = [8, 8], strides = [1, 1]} : vector<8x32xf32> to vector<8x8xf32>
    %11 = vector.extract_strided_slice %7 {offsets = [0, 0], sizes = [16, 8], strides = [1, 1]} : vector<16x32xf32> to vector<16x8xf32>
    %12 = vector.extract_strided_slice %9 {offsets = [0, 0], sizes = [16, 8], strides = [1, 1]} : vector<16x32xf32> to vector<16x8xf32>
    %cst_11 = arith.constant dense<0.000000e+00> : vector<8x16xf32>
    %13 = tpu.matmul %10, %11, %cst_11 {dimension_numbers = #tpu.dot_dimension_numbers<[1], [1], [0], [0], [0, 0, 1, 0], [], []>} : vector<8x8xf32>, vector<16x8xf32>, vector<8x16xf32> -> vector<8x16xf32>
    %cst_12 = arith.constant dense<0xFF800000> : vector<8xf32>
    %14 = vector.multi_reduction <maximumf>, %13, %cst_12 [1] : vector<8x16xf32> to vector<8xf32>
    %15 = vector.shape_cast %14 : vector<8xf32> to vector<8x1xf32>
    %16 = vector.broadcast %15 : vector<8x1xf32> to vector<8x16xf32>
    %17 = arith.subf %13, %16 : vector<8x16xf32>
    %18 = math.exp %17 : vector<8x16xf32>
    %cst_13 = arith.constant dense<0.000000e+00> : vector<8xf32>
    %19 = vector.multi_reduction <add>, %18, %cst_13 [1] : vector<8x16xf32> to vector<8xf32>
    %20 = vector.shape_cast %19 : vector<8xf32> to vector<8x1xf32>
    %21 = tpu.reciprocal %20 {approx = true} : vector<8x1xf32> -> vector<8x1xf32>
    %22 = vector.broadcast %21 : vector<8x1xf32> to vector<8x16xf32>
    %23 = arith.mulf %18, %22 : vector<8x16xf32>
    %cst_14 = arith.constant dense<0.000000e+00> : vector<8x8xf32>
    %24 = tpu.matmul %23, %12, %cst_14 {dimension_numbers = #tpu.dot_dimension_numbers<[1], [0], [0], [1], [0, 0, 1, 1], [], []>} : vector<8x16xf32>, vector<16x8xf32>, vector<8x8xf32> -> vector<8x8xf32>
    %c0_15 = arith.constant 0 : index
    %c0_16 = arith.constant 0 : index
    %25 = vector.load %arg9[%c0_15, %c0_16] : memref<8x32xf32, #tpu.memory_space<vmem>>, vector<8x8xf32>
    tpu.vector_store %arg9[%c0_15, %c0_16], %24 {strides = array<i32>} : memref<8x32xf32, #tpu.memory_space<vmem>>, vector<8x8xf32>,
    %26 = vector.extract_strided_slice %5 {offsets = [0, 8], sizes = [8, 8], strides = [1, 1]} : vector<8x32xf32> to vector<8x8xf32>
    %27 = vector.extract_strided_slice %7 {offsets = [0, 8], sizes = [16, 8], strides = [1, 1]} : vector<16x32xf32> to vector<16x8xf32>
    %28 = vector.extract_strided_slice %9 {offsets = [0, 8], sizes = [16, 8], strides = [1, 1]} : vector<16x32xf32> to vector<16x8xf32>
    %cst_17 = arith.constant dense<0.000000e+00> : vector<8x16xf32>
    %29 = tpu.matmul %26, %27, %cst_17 {dimension_numbers = #tpu.dot_dimension_numbers<[1], [1], [0], [0], [0, 0, 1, 0], [], []>} : vector<8x8xf32>, vector<16x8xf32>, vector<8x16xf32> -> vector<8x16xf32>
    %cst_18 = arith.constant dense<0xFF800000> : vector<8xf32>
    %30 = vector.multi_reduction <maximumf>, %29, %cst_18 [1] : vector<8x16xf32> to vector<8xf32>
    %31 = vector.shape_cast %30 : vector<8xf32> to vector<8x1xf32>
    %32 = vector.broadcast %31 : vector<8x1xf32> to vector<8x16xf32>
    %33 = arith.subf %29, %32 : vector<8x16xf32>
    %34 = math.exp %33 : vector<8x16xf32>
    %cst_19 = arith.constant dense<0.000000e+00> : vector<8xf32>
    %35 = vector.multi_reduction <add>, %34, %cst_19 [1] : vector<8x16xf32> to vector<8xf32>
    %36 = vector.shape_cast %35 : vector<8xf32> to vector<8x1xf32>
    %37 = tpu.reciprocal %36 {approx = true} : vector<8x1xf32> -> vector<8x1xf32>
    %38 = vector.broadcast %37 : vector<8x1xf32> to vector<8x16xf32>
    %39 = arith.mulf %34, %38 : vector<8x16xf32>
    %cst_20 = arith.constant dense<0.000000e+00> : vector<8x8xf32>
    %40 = tpu.matmul %39, %28, %cst_20 {dimension_numbers = #tpu.dot_dimension_numbers<[1], [0], [0], [1], [0, 0, 1, 1], [], []>} : vector<8x16xf32>, vector<16x8xf32>, vector<8x8xf32> -> vector<8x8xf32>
    %c0_21 = arith.constant 0 : index
    %c8 = arith.constant 8 : index
    %41 = vector.load %arg9[%c0_21, %c8] : memref<8x32xf32, #tpu.memory_space<vmem>>, vector<8x8xf32>
    tpu.vector_store %arg9[%c0_21, %c8], %40 {strides = array<i32>} : memref<8x32xf32, #tpu.memory_space<vmem>>, vector<8x8xf32>,
    %42 = vector.extract_strided_slice %5 {offsets = [0, 16], sizes = [8, 8], strides = [1, 1]} : vector<8x32xf32> to vector<8x8xf32>
    %43 = vector.extract_strided_slice %7 {offsets = [0, 16], sizes = [16, 8], strides = [1, 1]} : vector<16x32xf32> to vector<16x8xf32>
    %44 = vector.extract_strided_slice %9 {offsets = [0, 16], sizes = [16, 8], strides = [1, 1]} : vector<16x32xf32> to vector<16x8xf32>
    %cst_22 = arith.constant dense<0.000000e+00> : vector<8x16xf32>
    %45 = tpu.matmul %42, %43, %cst_22 {dimension_numbers = #tpu.dot_dimension_numbers<[1], [1], [0], [0], [0, 0, 1, 0], [], []>} : vector<8x8xf32>, vector<16x8xf32>, vector<8x16xf32> -> vector<8x16xf32>
    %cst_23 = arith.constant dense<0xFF800000> : vector<8xf32>
    %46 = vector.multi_reduction <maximumf>, %45, %cst_23 [1] : vector<8x16xf32> to vector<8xf32>
    %47 = vector.shape_cast %46 : vector<8xf32> to vector<8x1xf32>
    %48 = vector.broadcast %47 : vector<8x1xf32> to vector<8x16xf32>
    %49 = arith.subf %45, %48 : vector<8x16xf32>
    %50 = math.exp %49 : vector<8x16xf32>
    %cst_24 = arith.constant dense<0.000000e+00> : vector<8xf32>
    %51 = vector.multi_reduction <add>, %50, %cst_24 [1] : vector<8x16xf32> to vector<8xf32>
    %52 = vector.shape_cast %51 : vector<8xf32> to vector<8x1xf32>
    %53 = tpu.reciprocal %52 {approx = true} : vector<8x1xf32> -> vector<8x1xf32>
    %54 = vector.broadcast %53 : vector<8x1xf32> to vector<8x16xf32>
    %55 = arith.mulf %50, %54 : vector<8x16xf32>
    %cst_25 = arith.constant dense<0.000000e+00> : vector<8x8xf32>
    %56 = tpu.matmul %55, %44, %cst_25 {dimension_numbers = #tpu.dot_dimension_numbers<[1], [0], [0], [1], [0, 0, 1, 1], [], []>} : vector<8x16xf32>, vector<16x8xf32>, vector<8x8xf32> -> vector<8x8xf32>
    %c0_26 = arith.constant 0 : index
    %c16 = arith.constant 16 : index
    %57 = vector.load %arg9[%c0_26, %c16] : memref<8x32xf32, #tpu.memory_space<vmem>>, vector<8x8xf32>
    tpu.vector_store %arg9[%c0_26, %c16], %56 {strides = array<i32>} : memref<8x32xf32, #tpu.memory_space<vmem>>, vector<8x8xf32>,
    %58 = vector.extract_strided_slice %5 {offsets = [0, 24], sizes = [8, 8], strides = [1, 1]} : vector<8x32xf32> to vector<8x8xf32>
    %59 = vector.extract_strided_slice %7 {offsets = [0, 24], sizes = [16, 8], strides = [1, 1]} : vector<16x32xf32> to vector<16x8xf32>
    %60 = vector.extract_strided_slice %9 {offsets = [0, 24], sizes = [16, 8], strides = [1, 1]} : vector<16x32xf32> to vector<16x8xf32>
    %cst_27 = arith.constant dense<0.000000e+00> : vector<8x16xf32>
    %61 = tpu.matmul %58, %59, %cst_27 {dimension_numbers = #tpu.dot_dimension_numbers<[1], [1], [0], [0], [0, 0, 1, 0], [], []>} : vector<8x8xf32>, vector<16x8xf32>, vector<8x16xf32> -> vector<8x16xf32>
    %cst_28 = arith.constant dense<0xFF800000> : vector<8xf32>
    %62 = vector.multi_reduction <maximumf>, %61, %cst_28 [1] : vector<8x16xf32> to vector<8xf32>
    %63 = vector.shape_cast %62 : vector<8xf32> to vector<8x1xf32>
    %64 = vector.broadcast %63 : vector<8x1xf32> to vector<8x16xf32>
    %65 = arith.subf %61, %64 : vector<8x16xf32>
    %66 = math.exp %65 : vector<8x16xf32>
    %cst_29 = arith.constant dense<0.000000e+00> : vector<8xf32>
    %67 = vector.multi_reduction <add>, %66, %cst_29 [1] : vector<8x16xf32> to vector<8xf32>
    %68 = vector.shape_cast %67 : vector<8xf32> to vector<8x1xf32>
    %69 = tpu.reciprocal %68 {approx = true} : vector<8x1xf32> -> vector<8x1xf32>
    %70 = vector.broadcast %69 : vector<8x1xf32> to vector<8x16xf32>
    %71 = arith.mulf %66, %70 : vector<8x16xf32>
    %cst_30 = arith.constant dense<0.000000e+00> : vector<8x8xf32>
    %72 = tpu.matmul %71, %60, %cst_30 {dimension_numbers = #tpu.dot_dimension_numbers<[1], [0], [0], [1], [0, 0, 1, 1], [], []>} : vector<8x16xf32>, vector<16x8xf32>, vector<8x8xf32> -> vector<8x8xf32>
    %c0_31 = arith.constant 0 : index
    %c24 = arith.constant 24 : index
    %73 = vector.load %arg9[%c0_31, %c24] : memref<8x32xf32, #tpu.memory_space<vmem>>, vector<8x8xf32>
    tpu.vector_store %arg9[%c0_31, %c24], %72 {strides = array<i32>} : memref<8x32xf32, #tpu.memory_space<vmem>>, vector<8x8xf32>,
    %c0_32 = arith.constant 0 : index
    %c0_33 = arith.constant 0 : index
    %74 = vector.load %arg9[%c0_32, %c0_33] : memref<8x32xf32, #tpu.memory_space<vmem>>, vector<8x32xf32>
    %c0_34 = arith.constant 0 : index
    %c0_35 = arith.constant 0 : index
    %75 = vector.load %arg6[%c0_34, %c0_35] : memref<32x32xf32, #tpu.memory_space<vmem>>, vector<32x32xf32>
    %cst_36 = arith.constant dense<0.000000e+00> : vector<8x32xf32>
    %76 = tpu.matmul %74, %75, %cst_36 {dimension_numbers = #tpu.dot_dimension_numbers<[1], [0], [0], [1], [0, 0, 1, 1], [], []>} : vector<8x32xf32>, vector<32x32xf32>, vector<8x32xf32> -> vector<8x32xf32>
    %c0_37 = arith.constant 0 : index
    %c0_38 = arith.constant 0 : index
    %77 = vector.load %arg7[%c0_37, %c0_38] : memref<1x32xf32, #tpu.memory_space<vmem>>, vector<1x32xf32>
    %78 = vector.broadcast %77 : vector<1x32xf32> to vector<8x32xf32>
    %79 = arith.addf %76, %78 : vector<8x32xf32>
    %c0_39 = arith.constant 0 : index
    %c0_40 = arith.constant 0 : index
    %c0_41 = arith.constant 0 : index
    %80 = vector.load %arg8[%c0_39, %c0_40, %c0_41] : memref<1x8x32xf32, #tpu.memory_space<vmem>>, vector<1x8x32xf32>
    %81 = vector.shape_cast %80 : vector<1x8x32xf32> to vector<8x32xf32>
    %82 = vector.shape_cast %79 : vector<8x32xf32> to vector<1x8x32xf32>
    tpu.vector_store %arg8[%c0_39, %c0_40, %c0_41], %82 {strides = array<i32>} : memref<1x8x32xf32, #tpu.memory_space<vmem>>, vector<1x8x32xf32>,
    return
  }
  func.func @transform_0(%arg0: i32, %arg1: i32) -> (i32, i32, i32) {
    %c0_i32 = arith.constant 0 : i32
    %c0_i32_0 = arith.constant 0 : i32
    return %arg0, %arg1, %c0_i32 : i32, i32, i32
  }
  func.func @transform_1(%arg0: i32, %arg1: i32) -> (i32, i32, i32) {
    %c0_i32 = arith.constant 0 : i32
    %c0_i32_0 = arith.constant 0 : i32
    %c0_i32_1 = arith.constant 0 : i32
    return %arg0, %c0_i32, %c0_i32_0 : i32, i32, i32
  }
  func.func @transform_2(%arg0: i32, %arg1: i32) -> (i32, i32, i32) {
    %c0_i32 = arith.constant 0 : i32
    %c0_i32_0 = arith.constant 0 : i32
    %c0_i32_1 = arith.constant 0 : i32
    return %arg0, %c0_i32, %c0_i32_0 : i32, i32, i32
  }
  func.func @transform_3(%arg0: i32, %arg1: i32) -> (i32, i32) {
    %c0_i32 = arith.constant 0 : i32
    %c0_i32_0 = arith.constant 0 : i32
    %c0_i32_1 = arith.constant 0 : i32
    return %c0_i32, %c0_i32_0 : i32, i32
  }
  func.func @transform_4(%arg0: i32, %arg1: i32) -> (i32, i32) {
    %c0_i32 = arith.constant 0 : i32
    %c0_i32_0 = arith.constant 0 : i32
    %c0_i32_1 = arith.constant 0 : i32
    return %c0_i32, %c0_i32_0 : i32, i32
  }
  func.func @transform_5(%arg0: i32, %arg1: i32) -> (i32, i32) {
    %c0_i32 = arith.constant 0 : i32
    %c0_i32_0 = arith.constant 0 : i32
    %c0_i32_1 = arith.constant 0 : i32
    return %c0_i32, %c0_i32_0 : i32, i32
  }
  func.func @transform_6(%arg0: i32, %arg1: i32) -> (i32, i32, i32) {
    %c0_i32 = arith.constant 0 : i32
    %c0_i32_0 = arith.constant 0 : i32
    return %arg0, %arg1, %c0_i32 : i32, i32, i32
  }
}

module attributes {stable_mosaic.version = 11 : i64} {
  func.func @_cross_attn_kernel(%arg0: i32, %arg1: i32, %arg2: memref<1x8x32xf32, #tpu.memory_space<vmem>>, %arg3: memref<1x16x32xf32, #tpu.memory_space<vmem>>, %arg4: memref<1x16x32xf32, #tpu.memory_space<vmem>>, %arg5: memref<32x32xf32, #tpu.memory_space<vmem>>, %arg6: memref<32x32xf32, #tpu.memory_space<vmem>>, %arg7: memref<1x32xf32, #tpu.memory_space<vmem>>, %arg8: memref<1x8x32xf32, #tpu.memory_space<vmem>>, %arg9: memref<8x32xf32, #tpu.memory_space<vmem>>) attributes {dimension_semantics = [#tpu.dimension_semantics<parallel>, #tpu.dimension_semantics<parallel>], iteration_bounds = array<i64: 2, 1>, scalar_prefetch = 0 : i64, scratch_operands = 1 : i64, tpu.core_type = #tpu.core_type<tc>, window_params = [{transform_indices = @transform_0, window_bounds = array<i64: 1, 8, 32>}, {transform_indices = @transform_1, window_bounds = array<i64: 1, 16, 32>}, {transform_indices = @transform_2, window_bounds = array<i64: 1, 16, 32>}, {pipeline_mode = #tpu.pipeline_mode<synchronous>, transform_indices = @transform_3, window_bounds = array<i64: 32, 32>}, {pipeline_mode = #tpu.pipeline_mode<synchronous>, transform_indices = @transform_4, window_bounds = array<i64: 32, 32>}, {pipeline_mode = #tpu.pipeline_mode<synchronous>, transform_indices = @transform_5, window_bounds = array<i64: 1, 32>}, {transform_indices = @transform_6, window_bounds = array<i64: 1, 8, 32>}]} {
    %c0 = arith.constant 0 : index
    %c0_0 = arith.constant 0 : index
    %c0_1 = arith.constant 0 : index
    %0 = vector.load %arg2[%c0, %c0_0, %c0_1] : memref<1x8x32xf32, #tpu.memory_space<vmem>>, vector<1x8x32xf32>
    %1 = vector.shape_cast %0 : vector<1x8x32xf32> to vector<8x32xf32>
    %c0_2 = arith.constant 0 : index
    %c0_3 = arith.constant 0 : index
    %2 = vector.load %arg5[%c0_2, %c0_3] : memref<32x32xf32, #tpu.memory_space<vmem>>, vector<32x32xf32>
    %cst = arith.constant dense<0.000000e+00> : vector<8x32xf32>
    %3 = tpu.matmul %1, %2, %cst {dimension_numbers = #tpu.dot_dimension_numbers<[1], [0], [0], [1], [0, 0, 1, 1], [], []>} : vector<8x32xf32>, vector<32x32xf32>, vector<8x32xf32> -> vector<8x32xf32>
    %cst_4 = arith.constant 0.353553385 : f32
    %4 = vector.broadcast %cst_4 : f32 to vector<8x32xf32>
    %5 = arith.mulf %3, %4 : vector<8x32xf32>
    %c0_5 = arith.constant 0 : index
    %c0_6 = arith.constant 0 : index
    %c0_7 = arith.constant 0 : index
    %6 = vector.load %arg3[%c0_5, %c0_6, %c0_7] : memref<1x16x32xf32, #tpu.memory_space<vmem>>, vector<1x16x32xf32>
    %7 = vector.shape_cast %6 : vector<1x16x32xf32> to vector<16x32xf32>
    %c0_8 = arith.constant 0 : index
    %c0_9 = arith.constant 0 : index
    %c0_10 = arith.constant 0 : index
    %8 = vector.load %arg4[%c0_8, %c0_9, %c0_10] : memref<1x16x32xf32, #tpu.memory_space<vmem>>, vector<1x16x32xf32>
    %9 = vector.shape_cast %8 : vector<1x16x32xf32> to vector<16x32xf32>
    %10 = vector.extract_strided_slice %5 {offsets = [0, 0], sizes = [8, 8], strides = [1, 1]} : vector<8x32xf32> to vector<8x8xf32>
    %11 = vector.extract_strided_slice %7 {offsets = [0, 0], sizes = [16, 8], strides = [1, 1]} : vector<16x32xf32> to vector<16x8xf32>
    %12 = vector.extract_strided_slice %9 {offsets = [0, 0], sizes = [16, 8], strides = [1, 1]} : vector<16x32xf32> to vector<16x8xf32>
    %cst_11 = arith.constant dense<0.000000e+00> : vector<8x16xf32>
    %13 = tpu.matmul %10, %11, %cst_11 {dimension_numbers = #tpu.dot_dimension_numbers<[1], [1], [0], [0], [0, 0, 1, 0], [], []>} : vector<8x8xf32>, vector<16x8xf32>, vector<8x16xf32> -> vector<8x16xf32>
    %cst_12 = arith.constant dense<0xFF800000> : vector<8xf32>
    %14 = vector.multi_reduction <maximumf>, %13, %cst_12 [1] : vector<8x16xf32> to vector<8xf32>
    %15 = vector.shape_cast %14 : vector<8xf32> to vector<8x1xf32>
    %16 = vector.broadcast %15 : vector<8x1xf32> to vector<8x16xf32>
    %17 = arith.subf %13, %16 : vector<8x16xf32>
    %18 = math.exp %17 : vector<8x16xf32>
    %cst_13 = arith.constant dense<0.000000e+00> : vector<8xf32>
    %19 = vector.multi_reduction <add>, %18, %cst_13 [1] : vector<8x16xf32> to vector<8xf32>
    %20 = vector.shape_cast %19 : vector<8xf32> to vector<8x1xf32>
    %21 = tpu.reciprocal %20 {approx = true} : vector<8x1xf32> -> vector<8x1xf32>
    %22 = vector.broadcast %21 : vector<8x1xf32> to vector<8x16xf32>
    %23 = arith.mulf %18, %22 : vector<8x16xf32>
    %cst_14 = arith.constant dense<0.000000e+00> : vector<8x8xf32>
    %24 = tpu.matmul %23, %12, %cst_14 {dimension_numbers = #tpu.dot_dimension_numbers<[1], [0], [0], [1], [0, 0, 1, 1], [], []>} : vector<8x16xf32>, vector<16x8xf32>, vector<8x8xf32> -> vector<8x8xf32>
    %c0_15 = arith.constant 0 : index
    %c0_16 = arith.constant 0 : index
    %25 = vector.load %arg9[%c0_15, %c0_16] : memref<8x32xf32, #tpu.memory_space<vmem>>, vector<8x8xf32>
    tpu.vector_store %arg9[%c0_15, %c0_16], %24 {strides = array<i32>} : memref<8x32xf32, #tpu.memory_space<vmem>>, vector<8x8xf32>,
    %26 = vector.extract_strided_slice %5 {offsets = [0, 8], sizes = [8, 8], strides = [1, 1]} : vector<8x32xf32> to vector<8x8xf32>
    %27 = vector.extract_strided_slice %7 {offsets = [0, 8], sizes = [16, 8], strides = [1, 1]} : vector<16x32xf32> to vector<16x8xf32>
    %28 = vector.extract_strided_slice %9 {offsets = [0, 8], sizes = [16, 8], strides = [1, 1]} : vector<16x32xf32> to vector<16x8xf32>
    %cst_17 = arith.constant dense<0.000000e+00> : vector<8x16xf32>
    %29 = tpu.matmul %26, %27, %cst_17 {dimension_numbers = #tpu.dot_dimension_numbers<[1], [1], [0], [0], [0, 0, 1, 0], [], []>} : vector<8x8xf32>, vector<16x8xf32>, vector<8x16xf32> -> vector<8x16xf32>
    %cst_18 = arith.constant dense<0xFF800000> : vector<8xf32>
    %30 = vector.multi_reduction <maximumf>, %29, %cst_18 [1] : vector<8x16xf32> to vector<8xf32>
    %31 = vector.shape_cast %30 : vector<8xf32> to vector<8x1xf32>
    %32 = vector.broadcast %31 : vector<8x1xf32> to vector<8x16xf32>
    %33 = arith.subf %29, %32 : vector<8x16xf32>
    %34 = math.exp %33 : vector<8x16xf32>
    %cst_19 = arith.constant dense<0.000000e+00> : vector<8xf32>
    %35 = vector.multi_reduction <add>, %34, %cst_19 [1] : vector<8x16xf32> to vector<8xf32>
    %36 = vector.shape_cast %35 : vector<8xf32> to vector<8x1xf32>
    %37 = tpu.reciprocal %36 {approx = true} : vector<8x1xf32> -> vector<8x1xf32>
    %38 = vector.broadcast %37 : vector<8x1xf32> to vector<8x16xf32>
    %39 = arith.mulf %34, %38 : vector<8x16xf32>
    %cst_20 = arith.constant dense<0.000000e+00> : vector<8x8xf32>
    %40 = tpu.matmul %39, %28, %cst_20 {dimension_numbers = #tpu.dot_dimension_numbers<[1], [0], [0], [1], [0, 0, 1, 1], [], []>} : vector<8x16xf32>, vector<16x8xf32>, vector<8x8xf32> -> vector<8x8xf32>
    %c0_21 = arith.constant 0 : index
    %c8 = arith.constant 8 : index
    %41 = vector.load %arg9[%c0_21, %c8] : memref<8x32xf32, #tpu.memory_space<vmem>>, vector<8x8xf32>
    tpu.vector_store %arg9[%c0_21, %c8], %40 {strides = array<i32>} : memref<8x32xf32, #tpu.memory_space<vmem>>, vector<8x8xf32>,
    %42 = vector.extract_strided_slice %5 {offsets = [0, 16], sizes = [8, 8], strides = [1, 1]} : vector<8x32xf32> to vector<8x8xf32>
    %43 = vector.extract_strided_slice %7 {offsets = [0, 16], sizes = [16, 8], strides = [1, 1]} : vector<16x32xf32> to vector<16x8xf32>
    %44 = vector.extract_strided_slice %9 {offsets = [0, 16], sizes = [16, 8], strides = [1, 1]} : vector<16x32xf32> to vector<16x8xf32>
    %cst_22 = arith.constant dense<0.000000e+00> : vector<8x16xf32>
    %45 = tpu.matmul %42, %43, %cst_22 {dimension_numbers = #tpu.dot_dimension_numbers<[1], [1], [0], [0], [0, 0, 1, 0], [], []>} : vector<8x8xf32>, vector<16x8xf32>, vector<8x16xf32> -> vector<8x16xf32>
    %cst_23 = arith.constant dense<0xFF800000> : vector<8xf32>
    %46 = vector.multi_reduction <maximumf>, %45, %cst_23 [1] : vector<8x16xf32> to vector<8xf32>
    %47 = vector.shape_cast %46 : vector<8xf32> to vector<8x1xf32>
    %48 = vector.broadcast %47 : vector<8x1xf32> to vector<8x16xf32>
    %49 = arith.subf %45, %48 : vector<8x16xf32>
    %50 = math.exp %49 : vector<8x16xf32>
    %cst_24 = arith.constant dense<0.000000e+00> : vector<8xf32>
    %51 = vector.multi_reduction <add>, %50, %cst_24 [1] : vector<8x16xf32> to vector<8xf32>
    %52 = vector.shape_cast %51 : vector<8xf32> to vector<8x1xf32>
    %53 = tpu.reciprocal %52 {approx = true} : vector<8x1xf32> -> vector<8x1xf32>
    %54 = vector.broadcast %53 : vector<8x1xf32> to vector<8x16xf32>
    %55 = arith.mulf %50, %54 : vector<8x16xf32>
    %cst_25 = arith.constant dense<0.000000e+00> : vector<8x8xf32>
    %56 = tpu.matmul %55, %44, %cst_25 {dimension_numbers = #tpu.dot_dimension_numbers<[1], [0], [0], [1], [0, 0, 1, 1], [], []>} : vector<8x16xf32>, vector<16x8xf32>, vector<8x8xf32> -> vector<8x8xf32>
    %c0_26 = arith.constant 0 : index
    %c16 = arith.constant 16 : index
    %57 = vector.load %arg9[%c0_26, %c16] : memref<8x32xf32, #tpu.memory_space<vmem>>, vector<8x8xf32>
    tpu.vector_store %arg9[%c0_26, %c16], %56 {strides = array<i32>} : memref<8x32xf32, #tpu.memory_space<vmem>>, vector<8x8xf32>,
    %58 = vector.extract_strided_slice %5 {offsets = [0, 24], sizes = [8, 8], strides = [1, 1]} : vector<8x32xf32> to vector<8x8xf32>
    %59 = vector.extract_strided_slice %7 {offsets = [0, 24], sizes = [16, 8], strides = [1, 1]} : vector<16x32xf32> to vector<16x8xf32>
    %60 = vector.extract_strided_slice %9 {offsets = [0, 24], sizes = [16, 8], strides = [1, 1]} : vector<16x32xf32> to vector<16x8xf32>
    %cst_27 = arith.constant dense<0.000000e+00> : vector<8x16xf32>
    %61 = tpu.matmul %58, %59, %cst_27 {dimension_numbers = #tpu.dot_dimension_numbers<[1], [1], [0], [0], [0, 0, 1, 0], [], []>} : vector<8x8xf32>, vector<16x8xf32>, vector<8x16xf32> -> vector<8x16xf32>
    %cst_28 = arith.constant dense<0xFF800000> : vector<8xf32>
    %62 = vector.multi_reduction <maximumf>, %61, %cst_28 [1] : vector<8x16xf32> to vector<8xf32>
    %63 = vector.shape_cast %62 : vector<8xf32> to vector<8x1xf32>
    %64 = vector.broadcast %63 : vector<8x1xf32> to vector<8x16xf32>
    %65 = arith.subf %61, %64 : vector<8x16xf32>
    %66 = math.exp %65 : vector<8x16xf32>
    %cst_29 = arith.constant dense<0.000000e+00> : vector<8xf32>
    %67 = vector.multi_reduction <add>, %66, %cst_29 [1] : vector<8x16xf32> to vector<8xf32>
    %68 = vector.shape_cast %67 : vector<8xf32> to vector<8x1xf32>
    %69 = tpu.reciprocal %68 {approx = true} : vector<8x1xf32> -> vector<8x1xf32>
    %70 = vector.broadcast %69 : vector<8x1xf32> to vector<8x16xf32>
    %71 = arith.mulf %66, %70 : vector<8x16xf32>
    %cst_30 = arith.constant dense<0.000000e+00> : vector<8x8xf32>
    %72 = tpu.matmul %71, %60, %cst_30 {dimension_numbers = #tpu.dot_dimension_numbers<[1], [0], [0], [1], [0, 0, 1, 1], [], []>} : vector<8x16xf32>, vector<16x8xf32>, vector<8x8xf32> -> vector<8x8xf32>
    %c0_31 = arith.constant 0 : index
    %c24 = arith.constant 24 : index
    %73 = vector.load %arg9[%c0_31, %c24] : memref<8x32xf32, #tpu.memory_space<vmem>>, vector<8x8xf32>
    tpu.vector_store %arg9[%c0_31, %c24], %72 {strides = array<i32>} : memref<8x32xf32, #tpu.memory_space<vmem>>, vector<8x8xf32>,
    %c0_32 = arith.constant 0 : index
    %c0_33 = arith.constant 0 : index
    %74 = vector.load %arg9[%c0_32, %c0_33] : memref<8x32xf32, #tpu.memory_space<vmem>>, vector<8x32xf32>
    %c0_34 = arith.constant 0 : index
    %c0_35 = arith.constant 0 : index
    %75 = vector.load %arg6[%c0_34, %c0_35] : memref<32x32xf32, #tpu.memory_space<vmem>>, vector<32x32xf32>
    %cst_36 = arith.constant dense<0.000000e+00> : vector<8x32xf32>
    %76 = tpu.matmul %74, %75, %cst_36 {dimension_numbers = #tpu.dot_dimension_numbers<[1], [0], [0], [1], [0, 0, 1, 1], [], []>} : vector<8x32xf32>, vector<32x32xf32>, vector<8x32xf32> -> vector<8x32xf32>
    %c0_37 = arith.constant 0 : index
    %c0_38 = arith.constant 0 : index
    %77 = vector.load %arg7[%c0_37, %c0_38] : memref<1x32xf32, #tpu.memory_space<vmem>>, vector<1x32xf32>
    %78 = vector.broadcast %77 : vector<1x32xf32> to vector<8x32xf32>
    %79 = arith.addf %76, %78 : vector<8x32xf32>
    %c0_39 = arith.constant 0 : index
    %c0_40 = arith.constant 0 : index
    %c0_41 = arith.constant 0 : index
    %80 = vector.load %arg8[%c0_39, %c0_40, %c0_41] : memref<1x8x32xf32, #tpu.memory_space<vmem>>, vector<1x8x32xf32>
    %81 = vector.shape_cast %80 : vector<1x8x32xf32> to vector<8x32xf32>
    %82 = vector.shape_cast %79 : vector<8x32xf32> to vector<1x8x32xf32>
    tpu.vector_store %arg8[%c0_39, %c0_40, %c0_41], %82 {strides = array<i32>} : memref<1x8x32xf32, #tpu.memory_space<vmem>>, vector<1x8x32xf32>,
    return
  }
  func.func @transform_0(%arg0: i32, %arg1: i32) -> (i32, i32, i32) {
    %c0_i32 = arith.constant 0 : i32
    %c0_i32_0 = arith.constant 0 : i32
    return %arg0, %arg1, %c0_i32 : i32, i32, i32
  }
  func.func @transform_1(%arg0: i32, %arg1: i32) -> (i32, i32, i32) {
    %c0_i32 = arith.constant 0 : i32
    %c0_i32_0 = arith.constant 0 : i32
    %c0_i32_1 = arith.constant 0 : i32
    return %arg0, %c0_i32, %c0_i32_0 : i32, i32, i32
  }
  func.func @transform_2(%arg0: i32, %arg1: i32) -> (i32, i32, i32) {
    %c0_i32 = arith.constant 0 : i32
    %c0_i32_0 = arith.constant 0 : i32
    %c0_i32_1 = arith.constant 0 : i32
    return %arg0, %c0_i32, %c0_i32_0 : i32, i32, i32
  }
  func.func @transform_3(%arg0: i32, %arg1: i32) -> (i32, i32) {
    %c0_i32 = arith.constant 0 : i32
    %c0_i32_0 = arith.constant 0 : i32
    %c0_i32_1 = arith.constant 0 : i32
    return %c0_i32, %c0_i32_0 : i32, i32
  }
  func.func @transform_4(%arg0: i32, %arg1: i32) -> (i32, i32) {
    %c0_i32 = arith.constant 0 : i32
    %c0_i32_0 = arith.constant 0 : i32
    %c0_i32_1 = arith.constant 0 : i32
    return %c0_i32, %c0_i32_0 : i32, i32
  }
  func.func @transform_5(%arg0: i32, %arg1: i32) -> (i32, i32) {
    %c0_i32 = arith.constant 0 : i32
    %c0_i32_0 = arith.constant 0 : i32
    %c0_i32_1 = arith.constant 0 : i32
    return %c0_i32, %c0_i32_0 : i32, i32
  }
  func.func @transform_6(%arg0: i32, %arg1: i32) -> (i32, i32, i32) {
    %c0_i32 = arith.constant 0 : i32
    %c0_i32_0 = arith.constant 0 : i32
    return %arg0, %arg1, %c0_i32 : i32, i32, i32
  }
}

</mosaic_0001>

<bundles_post_ra>
// kernel: tpu_custom_call.1
= control target key start
LH: loop header
LB: loop body
LE: loop exit
PB: predicated region body
PF: predicated region fallthrough
CT: control target
= control target key end

     0   :  { %s1605_s0 = inlined_call_operand.hbm [shape: f32[2,8,32], index: 0, kind: input, shape index: {}]   ;;  %s1606_s1 = inlined_call_operand.hbm [shape: f32[2,16,32], index: 1, kind: input, shape index: {}]   ;;  %s1607_s2 = inlined_call_operand.hbm [shape: f32[2,16,32], index: 2, kind: input, shape index: {}]   ;;  %s1608_s3 = inlined_call_operand.hbm [shape: f32[32,32], index: 3, kind: input, shape index: {}]   ;;  %s1609_s4 = inlined_call_operand.hbm [shape: f32[32,32], index: 4, kind: input, shape index: {}]   ;;  %s1610_s5 = inlined_call_operand.vmem [shape: f32[1,32], index: 5, kind: input, shape index: {}]   ;;  %s1611_s6 = inlined_call_operand.hbm [shape: f32[2,8,32], index: 6, kind: output, shape index: {}]  }
   0x1   :  { %1615 = sst [smem:[#allocation19_spill]] %s1606_s1 }
   0x2   :  { %1616 = sst [smem:[#allocation20_spill]] %s1608_s3 }
   0x3   :  { %11 = vsyncpa [#allocation4], 0 }
   0x4   :  { %13 = vsyncpa [#allocation4 + $0x1], 0 }
   0x5   :  { %14 = vsyncpa [#allocation7], 0 }
   0x6   :  { %15 = vsyncpa [#allocation10], 0 }
   0x7   :  { %16 = vsyncpa [#allocation5], 0 }
   0x8   :  { %18 = vsyncpa [#allocation5 + $0x1], 0  ;;  %s1341_s21 = smov 0   ;;  %s1343_s22 = smov 0  }
   0x9   :  { %s1345_s23 = smov 0   ;;  %s1347_s24 = smov 0  }
   0xa   :  { %s1349_s25 = smov 0   ;;  %s1351_s26 = smov 0  }
   0xb LB: > { %1617 = sst [smem:[#allocation17_spill]] %s1272_s21  ;;  %s1612_s27 = sadd.s32 4294967295, %s1292_s26   ;;  %s1292_s26 = sphi %s1351_s26, %s24_s26   ;;  %s1288_s25 = sphi %s1349_s25, %s1638_s25   ;;  %s1284_s24 = sphi %s1347_s24, %s1637_s24   ;;  %s1280_s23 = sphi %s1345_s23, %s1636_s23   ;;  %s1276_s22 = sphi %s1343_s22, %s1635_s22   ;;  %s1272_s21 = sphi %s1341_s21, %s1634_s21  }
   0xc   : > { %s877_s28 = sadd.s32 4294967294, %s1292_s26   ;;  %p58_p0 = scmp.ne.s32.totalorder %s1276_s22, %s1272_s21 }
   0xd   : > { %p1377_p1 = scmp.eq.s32.totalorder %s1612_s27, 0  ;;  %p205_p2 = scmp.eq.s32.totalorder %s877_s28, 1 }
   0xe   : > { %p878_p3 = scmp.ge.s32.totalorder %s1292_s26, 1  ;;  %p212_p5 = scmp.lt.s32.totalorder %s1292_s26, 3 }
   0xf   : > { %p1384_p4 = por %p1377_p1, %p58_p0  ;;  %p1389_p6 = por %p205_p2, %p58_p0 }
  0x10   : > { %s915_s8 = sshll.u32 %s1284_s24, 4  ;;  %p1394_p7 = pnand %p878_p3, %p212_p5 }
  0x11   : > { %s1620_s7 = scalar_select %p1389_p6, 1, 0 }
  0x12   : > { %s1623_s1 = sld [smem:[#allocation19_spill]]  ;;  %p933_p8 = pneg %p1394_p7 }
  0x13   : > { %1621 = sst [smem:[#allocation18_spill]] %s1620_s7  ;;  %s1294_s14 = smov [#allocation6]  }
  0x14   : > { %s228_s15 = sshll.u32 %s1294_s14, 4  ;;  %p1408_p9 = pnand %p933_p8, %p1384_p4  ;;  %s229_s15 = int_to_ptr.vmem [resolvable:$true] %s228_s15 }
  0x15   : > { %s242_s19 = scalar_lea.hbm %s1607_s2, %s915_s8 }
  0x16   : > { %s243_s20 = sshll.u32 %s242_s19, 4  ;;  %p1056_p11 = pneg %p1408_p9  ;;  %s244_s20 = int_to_ptr.hbm [resolvable:$true] %s243_s20 }
  0x18   : > { %s225_s12 = scalar_lea.hbm %s1623_s1, %s915_s8  ;;  %s1059_s14 = scalar_lea.hbm %s1623_s1, 32 }
  0x19   : > { %s226_s13 = sshll.u32 %s225_s12, 4  ;;  %s227_s13 = int_to_ptr.hbm [resolvable:$true] %s226_s13 }
  0x1a   : > { %s1052_s28 = sshra.s32 %s227_s13, 4  ;;  %s1053_s28 = int_to_ptr.hbm [resolvable:$true] %s1052_s28 }
  0x1b   : > { %s1054_s10 = scalar_lea.hbm %s1053_s28, 16  ;;  %p1060_p0 = scmp.lt.s32.totalorder %s1053_s28, %s1623_s1 }
  0x1c   : > { %p1055_p10 = scmp.ne.s32.totalorder %s1053_s28, %s1054_s10  ;;  %p1061_p2 = scmp.lt.s32.totalorder %s1059_s14, %s1054_s10 }
  0x1e   : > { %p1057_p12 = pnand %p1056_p11, %p1055_p10  ;;  %p1062_p3 = por %p1061_p2, %p1060_p0 }
  0x20   : > { %p1058_p13 = pneg %p1057_p12 }
  0x22   : > { %p1063_p5 = pnand %p1062_p3, %p1058_p13 }
  0x24   : > { %1066 = shalt.err (!%p1063_p5)
}
  0x25   : > { %s1295_s8 = smov 128   ;;  %s1296_s18 = smov 8  }
  0x26   : > { %936 = dma.hbm_to_vmem [thread:$0]  (!%p1408_p9), %s227_s13, 256, %s229_s15, [#allocation7], %s1295_s8, %s1295_s8, %s1296_s18  }
  0x27   : > { %s1625_s3 = sld [smem:[#allocation20_spill]]  ;;  %s1297_s28 = smov [#allocation9]  }
  0x28   : > { %s259_s10 = sshll.u32 %s1297_s28, 4  ;;  %p1440_p12 = pnand %p933_p8, %p1377_p1  ;;  %s260_s10 = int_to_ptr.vmem [resolvable:$true] %s259_s10 }
  0x29   : > { %s1298_s13 = smov [#allocation8]   ;;  %s271_s19 = sshll.u32 %s1609_s4, 4  ;;  %s272_s19 = int_to_ptr.hbm [resolvable:$true] %s271_s19 }
  0x2a   : > { %s245_s15 = sshll.u32 %s1298_s13, 4  ;;  %s1112_s11 = sshra.s32 %s244_s20, 4  ;;  %s246_s15 = int_to_ptr.vmem [resolvable:$true] %s245_s15  ;;  %s1113_s11 = int_to_ptr.hbm [resolvable:$true] %s1112_s11 }
  0x2b   : > { %s1114_s28 = scalar_lea.hbm %s1113_s11, 16  ;;  %p1120_p2 = scmp.lt.s32.totalorder %s1113_s11, %s1607_s2 }
  0x2c   : > { %p1115_p8 = scmp.ne.s32.totalorder %s1113_s11, %s1114_s28 }
  0x2d   : > { %s257_s27 = sshll.u32 %s1625_s3, 4  ;;  %s1119_s3 = scalar_lea.hbm %s1607_s2, 32  ;;  %s258_s27 = int_to_ptr.hbm [resolvable:$true] %s257_s27 }
  0x2e   : > { %942 = dma.hbm_to_vmem [thread:$0]  (!%p1440_p12), %s258_s27, 512, %s260_s10, [#allocation10], %s1295_s8, %s1295_s8, %s1296_s18  }
  0x2f   : > { %p1117_p13 = pnand %p1115_p8, %p1056_p11  ;;  %p1121_p3 = scmp.lt.s32.totalorder %s1119_s3, %s1114_s28 }
  0x31   : > { %p1118_p0 = pneg %p1117_p13  ;;  %p1122_p5 = por %p1121_p3, %p1120_p2 }
  0x33   : > { %p1123_p10 = pnand %p1122_p5, %p1118_p0 }
  0x35   : > { %1126 = shalt.err (!%p1123_p10)
}
  0x36   : > { %939 = dma.hbm_to_vmem [thread:$0]  (!%p1408_p9), %s244_s20, 256, %s246_s15, [#allocation7], %s1295_s8, %s1295_s8, %s1296_s18  }
  0x37   : > { %s1299_s1 = smov [#allocation11]   ;;  %s36_s21 = sadd.s32 1, %s1288_s25 }
  0x38   : > { %s273_s3 = sshll.u32 %s1299_s1, 4  ;;  %s45_s7 = sadd.s32 1, %s1280_s23  ;;  %s274_s3 = int_to_ptr.vmem [resolvable:$true] %s273_s3 }
  0x39   : > { %945 = dma.hbm_to_vmem [thread:$0]  (!%p1440_p12), %s272_s19, 512, %s274_s3, [#allocation10], %s1295_s8, %s1295_s8, %s1296_s18  }
  0x3a   : > { %p38_p11 = scmp.ge.s32.totalorder %s36_s21, 2  ;;  %p52_p10 = scmp.ne.s32.totalorder %s1280_s23, %s1276_s22 }
  0x3b   : > { %p53_p8 = scmp.eq.s32.totalorder %s1292_s26, 0  ;;  %s1627_s16 = sadd.s32 4294967295, %s1292_s26  }
  0x3c   : > { %p199_p9 = scmp.eq.s32.totalorder %s1627_s16, 1  ;;  %s1640_s21 = smov (%p38_p11, %s36_s21), 0 }
  0x3d   : > { %p1480_p13 = por %p53_p8, %p52_p10  ;;  %s40_s8 = ssub.s32 %s1288_s25, %s1640_s21 }
  0x3e   : > { %p1484_p0 = por %p199_p9, %p52_p10  ;;  %p956_p12 = scmp.lt.s32.totalorder %s1292_s26, 2 }
  0x3f   : > { %p43_p2 = scmp.eq.s32.totalorder %s40_s8, 0  ;;  %s290_s18 = sand.u32 1, %s1280_s23  }
  0x40   : > { %s886_s10 = sshll.u32 %s290_s18, 3  ;;  %s887_s15 = sshll.u32 %s1288_s25, 3 }
  0x41   : > { %s1493_s12 = scalar_select %p43_p2, %s1280_s23, %s45_s7  }
  0x42   : > { %s299_s19 = scalar_lea.hbm %s1605_s0, %s887_s15  ;;  %s294_s11 = scalar_lea.vmem [#allocation3], %s886_s10 }
  0x43   : > { %s303_s28 = sshll.u32 %s294_s11, 4  ;;  %s301_s13 = sshll.u32 %s299_s19, 4  ;;  %s304_s28 = int_to_ptr.vmem [resolvable:$true] %s303_s28  ;;  %s302_s13 = int_to_ptr.hbm [resolvable:$true] %s301_s13 }
  0x44   : > { %p947_p3 = pnand %p956_p12, %p1480_p13  ;;  %s291_s1 = scalar_lea.sflag [#allocation4], %s290_s18 }
  0x45   : > { %312 = sbr.rel (%p1394_p7) target bundleno = 1148 (0x47c), region = 44  ;;  %s1504_s3 = sand.u32 (!%p1394_p7), 1, %s1276_s22  }
  0x46   : > { %949 = dma.hbm_to_vmem [thread:$0]  (!%p947_p3), %s302_s13, 128, %s304_s28, %s291_s1  }
  0x47   : > { %s889_s7 = sshll.u32 (!%p1394_p7), %s1504_s3, 3  ;;  %s315_s16 = scalar_lea.sflag (!%p1394_p7), [#allocation4], %s1504_s3 }
  0x48   : > { %s318_s8 = scalar_lea.vmem (!%p1394_p7), [#allocation3], %s889_s7 }
  0x4a   : > { %1255 = dma.done.wait (%p1384_p4), %s315_s16, 128  }
  0x4b   : > { %1257 = vsyncadd (%p1384_p4), %s315_s16, 4294967168 }
  0x4c   : > { %1259 = dma.done.wait (%p1384_p4), [#allocation7], 512  }
  0x4d   : > { %1261 = vsyncadd (%p1384_p4), [#allocation7], 4294966784 }
  0x4e   : > { %1263 = dma.done.wait (%p1377_p1), [#allocation10], 1024  }
  0x4f   : > { %1265 = vsyncadd (%p1377_p1), [#allocation10], 4294966272  ;;  %vm402_vm0 = vcmask 64512   ;;  %v372_v0 = vld [vmem:[#allocation9 + $0x18] sm:$0xff]  ;;  %v371_v1 = vld [vmem:[#allocation9 + $0x10] sm:$0xff]  ;;  %s1300_s9 = smov 120  }
  0x50   : > { %389 = vmatpush.msra.mxu0 %v372_v0  ;;  %v399_v2 = vld [vmem:[#allocation6 + $0x8] sm:$0xff]  ;;  %v398_v4 = vld [vmem:[#allocation6] sm:$0xff]  ;;  %s1301_s30 = smov 104   ;;  %v368_v6 = vld [vmem:[%s318_s8] sm:$0xff]  ;;  %vm373_vm1 = vcmask 261120   ;;  %s1302_s29 = smov 112  }
  0x51   : > { %v370_v3 = vld [vmem:[#allocation9 + $0x8] sm:$0xff]  ;;  %472 = vrot.lane.b32.xlu0 %v399_v2, %s1300_s9  ;;  %894 = vmatpush.xpose.msk.msra.mxu1 %vm402_vm0, %v399_v2  ;;  %v369_v5 = vld [vmem:[#allocation9] sm:$0xff]  ;;  %vm432_vm2 = vcmask 130048   ;;  %v401_v31 = vld [vmem:[#allocation8 + $0x8] sm:$0xff]  ;;  %s1303_s20 = smov 8   ;;  %s1304_s18 = smov 24  }
  0x52   : > { %390 = vmatpush.msra.mxu0 %v371_v1  ;;  %628 = vrot.lane.b32.xlu2 %v398_v4, %s1301_s30  ;;  %v400_v32 = vld [vmem:[#allocation8] sm:$0xff]  ;;  %s1305_s10 = smov 16   ;;  %vm546_vm3 = vcmask 130112   ;;  %vm624_vm4 = vcmask 195712   ;;  %vm702_vm5 = vcmask 261312   ;;  %s912_s15 = sshll.u32 %s1284_s24, 3 }
  0x53   : > { %461 = vmatpush.msra.mxu2 %v401_v31  ;;  %v1030_v38 = vpack.i.bf16 %v400_v32, %v401_v31  ;;  %s749_s19 = scalar_lea.hbm %s1611_s6, %s912_s15  ;;  %s367_s13 = scalar_lea.vmem [#allocation12], %s889_s7 }
  0x54   : > { %391 = vmatpush.msra.mxu0 %v370_v3  ;;  %s751_s1 = sshll.u32 %s367_s13, 4  ;;  %s753_s16 = sshll.u32 %s749_s19, 4  ;;  %s752_s1 = int_to_ptr.vmem [resolvable:$true] %s751_s1  ;;  %s754_s16 = int_to_ptr.hbm [resolvable:$true] %s753_s16 }
  0x55   : > { %895 = vmatpush.xpose.msk.msra.mxu1 %vm402_vm0, %v398_v4  ;;  %462 = vmatpush.msra.mxu2 %v400_v32  ;;  %s738_s24 = scalar_lea.sflag [#allocation5], %s1504_s3  ;;  %s1216_s8 = sshra.s32 %s754_s16, 4  ;;  %s1217_s8 = int_to_ptr.hbm [resolvable:$true] %s1216_s8 }
  0x56   : > { %392 = vmatpush.msra.mxu0 %v369_v5  ;;  %s1222_s7 = scalar_lea.hbm %s1611_s6, 16  ;;  %p1223_p5 = scmp.lt.s32.totalorder %s1217_s8, %s1611_s6 }
  0x57   : > { %893 = vmatmul.msk.f32.vlgmr.msra.gmra.mxu0 %vm373_vm1, %v368_v6 }
  0x59   : > { %470 = vrot.lane.b32.xlu0 %v398_v4, %s1300_s9 }
  0x61   : > { %552 = vrot.lane.b32.xlu0 %v399_v2, %s1302_s29 }
  0xac   : > { %v629_v12 = vpop.permute.xlu2 %628 }
  0xc3   : > { %v473_v9 = vpop.permute.xlu0 %472 }
  0xc4   : > { %898 = vmatpush.xpose.msk.msra.mxu3 %vm402_vm0, %v473_v9 }
  0xcb   : > { %v471_v10 = vpop.permute.xlu0 %470 }
  0xcc   : > { %899 = vmatpush.xpose.msk.msra.mxu3 %vm402_vm0, %v471_v10 }
  0xd3   : > { %v553_v11 = vpop.permute.xlu0 %552 }
  0xd4   : > { %v394_v7 = vpop.f32.mrf.mxu0  ;;  %902 = vmatpush.xpose.msk.msrb.mxu0 %vm402_vm0, %v553_v11  ;;  %v708_v11 = vld [vmem:[#allocation11 + $0x18] sm:$0xff] }
  0xd5   : > { %v397_v8 = vmul.f32 0.35355338, %v394_v7 }
  0xd7   : > { %626 = vrot.lane.b32.xlu2 %v397_v8, %s1301_s30  ;;  %468 = vrot.lane.b32.xlu1 %v397_v8, %s1300_s9 }
  0xd8   : > { %896 = vmatmul.msk.f32.vlgmr.msra.gmra.mxu1 %vm402_vm0, %v397_v8 }
  0xdf   : > { %548 = vrot.lane.b32.xlu2 %v397_v8, %s1302_s29  ;;  %630 = vrot.lane.b32.xlu1 %v399_v2, %s1301_s30 }
  0xe7   : > { %550 = vrot.lane.b32.xlu1 %v398_v4, %s1302_s29 }
 0x131   : > { %v627_v15 = vpop.permute.xlu2 %626 }
 0x139   : > { %v549_v19 = vpop.permute.xlu2 %548 }
 0x149   : > { %v469_v13 = vpop.permute.xlu1 %468 }
 0x14a   : > { %900 = vmatmul.msk.f32.vlgmr.msra.gmra.mxu3 %vm402_vm0, %v469_v13  ;;  %v706_v13 = vld [vmem:[#allocation11 + $0x8] sm:$0xff] }
 0x151   : > { %v631_v14 = vpop.permute.xlu1 %630 }
 0x152   : > { %906 = vmatpush.xpose.msk.msrb.mxu3 %vm402_vm0, %v631_v14  ;;  %v705_v14 = vld [vmem:[#allocation11] sm:$0xff] }
 0x155   : > { %v429_v16 = vpop.f32.mrf.mxu1 }
 0x156   : > { %907 = vmatpush.xpose.msk.msrb.mxu3 %vm402_vm0, %v629_v12  ;;  %v433_v17 = vsel %vm432_vm2, %v429_v16, -inf  ;;  %v707_v12 = vld [vmem:[#allocation11 + $0x10] sm:$0xff] }
 0x157   : > { %434 = vmax.xlane.f32.xlu0 %v433_v17 }
 0x159   : > { %908 = vmatmul.msk.f32.vlgmr.msrb.gmra.mxu3 %vm402_vm0, %v627_v15  ;;  %v551_v18 = vpop.permute.xlu1 %550 }
 0x15a   : > { %903 = vmatpush.xpose.msk.msrb.mxu0 %vm402_vm0, %v551_v18  ;;  %v1035_v18 = vld [vmem:[%s1610_s5] ss:$0 sm:$0xff] }
 0x15d   : > { %904 = vmatmul.msk.f32.vlgmr.msrb.gmra.mxu0 %vm402_vm0, %v549_v19 }
 0x15e   : > { %728 = vmatpush.msra.mxu0 %v708_v11 }
 0x160   : > { %729 = vmatpush.msra.mxu0 %v707_v12 }
 0x162   : > { %730 = vmatpush.msra.mxu0 %v706_v13 }
 0x164   : > { %731 = vmatpush.msra.mxu0 %v705_v14 }
 0x1ca   : > { %v435_v20 = vpop.xlane.xlu0 %434 }
 0x1cb   : > { %v436_v21 = vsub.f32 %v429_v16, %v435_v20 }
 0x1cd   : > { %v437_v22 = vmul.f32 1.442695, %v436_v21  ;;  %v497_v23 = vpop.f32.mrf.mxu3 }
 0x1ce   : > { %v500_v24 = vsel %vm432_vm2, %v497_v23, -inf }
 0x1cf   : > { %1036 = vpow2.f32 %v437_v22  ;;  %501 = vmax.xlane.f32.xlu1 %v500_v24 }
 0x1d5   : > { %v1037_v25 = vpop.eup %1036 }
 0x1d6   : > { %v439_v26 = vsel %vm432_vm2, %v1037_v25, 0.0 }
 0x1d7   : > { %440 = vadd.xlane.f32.xlu0 %v439_v26 }
 0x1da   : > { %v577_v29 = vpop.f32.mrf.mxu0 }
 0x1db   : > { %v580_v30 = vsel %vm432_vm2, %v577_v29, -inf }
 0x1dc   : > { %v655_v27 = vpop.f32.mrf.mxu3 }
 0x1dd   : > { %v658_v28 = vsel %vm432_vm2, %v655_v27, -inf }
 0x1de   : > { %659 = vmax.xlane.f32.xlu2 %v658_v28 }
 0x1e6   : > { %581 = vmax.xlane.f32.xlu2 %v580_v30 }
 0x1fe   : > { %1021 = vrot.lane.b32.xlu2 %v1030_v38, %s1300_s9  ;;  %s1218_s9 = scalar_lea.hbm %s1217_s8, 8 }
 0x1ff   : > { %p1219_p1 = scmp.ne.s32.totalorder %s1217_s8, %s1218_s9  ;;  %p1224_p11 = scmp.lt.s32.totalorder %s1222_s7, %s1218_s9 }
 0x201   : > { %p1220_p4 = pnand %p1219_p1, %p1484_p0  ;;  %p1225_p10 = por %p1224_p11, %p1223_p5 }
 0x203   : > { %p1221_p7 = pneg %p1220_p4 }
 0x205   : > { %p1226_p8 = pnand %p1225_p10, %p1221_p7 }
 0x242   : > { %v502_v40 = vpop.xlane.xlu1 %501 }
 0x243   : > { %v503_v44 = vsub.f32 %v497_v23, %v502_v40 }
 0x245   : > { %v504_v47 = vmul.f32 1.442695, %v503_v44 }
 0x24a   : > { %v441_v33 = vpop.xlane.xlu0 %440 }
 0x24b   : > { %1038 = vrcp.f32 %v441_v33 }
 0x251   : > { %v1039_v34 = vpop.eup %1038  ;;  %v660_v35 = vpop.xlane.xlu2 %659 }
 0x252   : > { %v661_v36 = vsub.f32 %v655_v27, %v660_v35  ;;  %v443_v37 = vmul.f32 %v1039_v34, %v1037_v25 }
 0x254   : > { %v662_v39 = vmul.f32 1.442695, %v661_v36  ;;  %897 = vmatmul.msk.f32.vlgmr.msra.gmra.mxu2 %vm432_vm2, %v443_v37 }
 0x256   : > { %1040 = vpow2.f32 %v662_v39 }
 0x259   : > { %v582_v41 = vpop.xlane.xlu2 %581 }
 0x25a   : > { %v583_v42 = vsub.f32 %v577_v29, %v582_v41 }
 0x25c   : > { %v1041_v43 = vpop.eup %1040  ;;  %v584_v45 = vmul.f32 1.442695, %v583_v42 }
 0x25d   : > { %v664_v46 = vsel %vm432_vm2, %v1041_v43, 0.0 }
 0x25e   : > { %1042 = vpow2.f32 %v584_v45  ;;  %665 = vadd.xlane.f32.xlu0 %v664_v46 }
 0x25f   : > { %1044 = vpow2.f32 %v504_v47 }
 0x261   : > { %v1022_v52 = vpop.permute.xlu2 %1021 }
 0x262   : > { %v1023_v53 = vunpack.i.l.bf16 %v1022_v52  ;;  %v1024_v54 = vunpack.i.h.bf16 %v1022_v52 }
 0x264   : > { %v1043_v48 = vpop.eup %1042  ;;  %536 = vmatpush.msrb.mxu2 %v1023_v53 }
 0x265   : > { %v586_v49 = vsel %vm432_vm2, %v1043_v48, 0.0  ;;  %v1045_v50 = vpop.eup %1044 }
 0x266   : > { %587 = vadd.xlane.f32.xlu1 %v586_v49  ;;  %v506_v51 = vsel %vm432_vm2, %v1045_v50, 0.0  ;;  %537 = vmatpush.msrb.mxu2 %v1024_v54 }
 0x26e   : > { %507 = vadd.xlane.f32.xlu1 %v506_v51 }
 0x272   : > { %1026 = vrot.lane.b32.xlu0 %v1030_v38, %s1301_s30 }
 0x287   : > { %1031 = vrot.lane.b32.xlu1 %v1030_v38, %s1302_s29 }
 0x2d1   : > { %v666_v57 = vpop.xlane.xlu0 %665 }
 0x2d7   : > { %v464_v55 = vpop.f32.mrf.mxu2 }
 0x2d8   : > { %467 = vst.msk [vmem:[#allocation2] sm:$0xff] %vm402_vm0, %v464_v55 }
 0x2d9   : > { %v588_v56 = vpop.xlane.xlu1 %587 }
 0x2e1   : > { %v508_v58 = vpop.xlane.xlu1 %507 }
 0x2e2   : > { %1046 = vrcp.f32 %v508_v58 }
 0x2e3   : > { %1048 = vrcp.f32 %v666_v57 }
 0x2e4   : > { %v1027_v59 = vpop.permute.xlu0 %1026  ;;  %1050 = vrcp.f32 %v588_v56 }
 0x2e5   : > { %v1029_v60 = vunpack.i.h.bf16 %v1027_v59  ;;  %v1028_v61 = vunpack.i.l.bf16 %v1027_v59 }
 0x2e7   : > { %692 = vmatpush.msra.mxu2 %v1028_v61 }
 0x2e8   : > { %v1047_v62 = vpop.eup %1046 }
 0x2e9   : > { %v510_v63 = vmul.f32 %v1047_v62, %v1045_v50  ;;  %693 = vmatpush.msra.mxu2 %v1029_v60  ;;  %v1049_v0 = vpop.eup %1048 }
 0x2ea   : > { %v668_v1 = vmul.f32 %v1049_v0, %v1041_v43  ;;  %v1051_v3 = vpop.eup %1050 }
 0x2eb   : > { %901 = vmatmul.msk.f32.vlgmr.msrb.gmra.mxu2 %vm432_vm2, %v510_v63  ;;  %v590_v6 = vmul.f32 %v1051_v3, %v1043_v48 }
 0x2f3   : > { %909 = vmatmul.msk.f32.vlgmr.msra.gmra.mxu2 %vm432_vm2, %v668_v1 }
 0x2f9   : > { %v1032_v2 = vpop.permute.xlu1 %1031 }
 0x2fa   : > { %v1033_v4 = vunpack.i.l.bf16 %v1032_v2  ;;  %v1034_v5 = vunpack.i.h.bf16 %v1032_v2 }
 0x2fc   : > { %614 = vmatpush.msrb.mxu1 %v1033_v4 }
 0x2fe   : > { %615 = vmatpush.msrb.mxu1 %v1034_v5 }
 0x2ff   : > { %905 = vmatmul.msk.f32.vlgmr.msrb.gmra.mxu1 %vm432_vm2, %v590_v6 }
 0x36e   : > { %v539_v7 = vpop.f32.mrf.mxu2 }
 0x36f   : > { %543 = vrot.lane.b32.xlu2 %v539_v7, %s1303_s20 }
 0x376   : > { %v695_v8 = vpop.f32.mrf.mxu2 }
 0x377   : > { %699 = vrot.lane.b32.xlu2 %v695_v8, %s1304_s18 }
 0x37c   : > { %v617_v9 = vpop.f32.mrf.mxu1 }
 0x37d   : > { %621 = vrot.lane.b32.xlu0 %v617_v9, %s1305_s10 }
 0x3c9   : > { %v544_v10 = vpop.permute.xlu2 %543 }
 0x3ca   : > { %547 = vst.msk [vmem:[#allocation2] sm:$0xff] %vm546_vm3, %v544_v10 }
 0x3d1   : > { %v700_v16 = vpop.permute.xlu2 %699 }
 0x3ef   : > { %v622_v15 = vpop.permute.xlu0 %621 }
 0x3f0   : > { %625 = vst.msk [vmem:[#allocation2] sm:$0xff] %vm624_vm4, %v622_v15 }
 0x3f1   : > { %703 = vst.msk [vmem:[#allocation2] sm:$0xff] %vm702_vm5, %v700_v16 }
 0x3f8   : > { %v704_v17 = vld [vmem:[#allocation2] sm:$0xff] }
 0x3f9   : > { %910 = vmatmul.msk.f32.vlgmr.msra.gmra.mxu0 %vm373_vm1, %v704_v17 }
 0x476   : > { %v733_v19 = vpop.f32.mrf.mxu0 }
 0x477   : > { %v734_v20 = vadd.f32 %v1035_v18, %v733_v19 }
 0x479   : > { %736 = vst.msk [vmem:[%s367_s13] sm:$0xff] %vm373_vm1, %v734_v20 }
 0x47a   : > { %1229 = shalt.err (!%p1226_p8)
}
 0x47b   : > { %931 = dma.vmem_to_hbm [thread:$0]  (%p1484_p0), %s752_s1, 128, %s754_s16, %s738_s24  }
 0x47c PF: > { %s1630_s3 = sld [smem:[#allocation17_spill]]  ;;  %p1632_p9 = scmp.ge.s32.totalorder %s1292_s26, 2 }
 0x47e   : > { %p951_p13 = pnand %p1632_p9, %p1389_p6 }
 0x480   : > { %p952_p12 = pneg %p951_p13 }
 0x482   : > { %s765_s15 = sand.u32 1, %s1630_s3  }
 0x483   : > { %s766_s14 = scalar_lea.sflag [#allocation5], %s765_s15 }
 0x484   : > { %1267 = dma.done.wait (%p952_p12), %s766_s14, 128  }
 0x485   : > { %1269 = vsyncadd (%p952_p12), %s766_s14, 4294967168  ;;  %s24_s26 = sadd.s32 1, %s1292_s26   ;;  %s1633_s27 = smov %s1640_s21 }
 0x486   : > { %p21_p2 = scmp.ge.s32.totalorder %s24_s26, 4   ;;  %s1634_s21 = smov %s1276_s22 }
 0x487   : > { %s1635_s22 = smov %s1280_s23  ;;  %s1636_s23 = smov %s1493_s12 }
 0x488   : > { %s1637_s24 = smov %s1288_s25  ;;  %s1638_s25 = smov %s1633_s27 }
 0x489   :  { %23 = sbr.rel (!%p21_p2) target bundleno = 11 (0xb), region = 107 }
 0x48e   :  { %772 = vsyncpa [#allocation4], 1 }
 0x48f   :  { %774 = vsyncpa [#allocation4 + $0x1], 1 }
 0x490   :  { %775 = vsyncpa [#allocation7], 1 }
 0x491   :  { %776 = vsyncpa [#allocation10], 1 }
 0x492   :  { %777 = vsyncpa [#allocation5], 1 }
 0x493   :  { %779 = vsyncpa [#allocation5 + $0x1], 1 }

// kernel: tpu_custom_call.1
= control target key start
LH: loop header
LB: loop body
LE: loop exit
PB: predicated region body
PF: predicated region fallthrough
CT: control target
= control target key end

     0   :  { %s1635_s0 = inlined_call_operand.hbm [shape: f32[2,8,32], index: 0, kind: input, shape index: {}]   ;;  %s1636_s1 = inlined_call_operand.hbm [shape: f32[2,16,32], index: 1, kind: input, shape index: {}]   ;;  %s1637_s2 = inlined_call_operand.hbm [shape: f32[2,16,32], index: 2, kind: input, shape index: {}]   ;;  %s1638_s3 = inlined_call_operand.hbm [shape: f32[32,32], index: 3, kind: input, shape index: {}]   ;;  %s1639_s4 = inlined_call_operand.hbm [shape: f32[32,32], index: 4, kind: input, shape index: {}]   ;;  %s1640_s5 = inlined_call_operand.vmem [shape: f32[1,32], index: 5, kind: input, shape index: {}]   ;;  %s1641_s6 = inlined_call_operand.hbm [shape: f32[2,8,32], index: 6, kind: output, shape index: {}]  }
   0x1   :  { %1654 = sst [smem:[#allocation24_spill]] %s1636_s1 }
   0x2   :  { %1655 = sst [smem:[#allocation25_spill]] %s1638_s3 }
   0x3   :  { %1656 = sst [smem:[#allocation26_spill]] %s1640_s5 }
   0x4   :  { %11 = vsyncpa [#allocation4], 0 }
   0x5   :  { %13 = vsyncpa [#allocation4 + $0x1], 0 }
   0x6   :  { %14 = vsyncpa [#allocation7], 0 }
   0x7   :  { %16 = vsyncpa [#allocation7 + $0x1], 0 }
   0x8   :  { %17 = vsyncpa [#allocation10], 0 }
   0x9   :  { %18 = vsyncpa [#allocation5], 0 }
   0xa   :  { %20 = vsyncpa [#allocation5 + $0x1], 0  ;;  %s1393_s21 = smov 0   ;;  %s1395_s22 = smov 0  }
   0xb   :  { %s1397_s23 = smov 0   ;;  %s1399_s24 = smov 0  }
   0xc   :  { %s1401_s25 = smov 0   ;;  %s1403_s26 = smov 0  }
   0xd LB: > { %1657 = sst [smem:[#allocation17_spill]] %s1326_s21  ;;  %s1424_s27 = sadd.s32 4294967295, %s1346_s26   ;;  %s1346_s26 = sphi %s1403_s26, %s26_s26   ;;  %s1342_s25 = sphi %s1401_s25, %s1686_s25   ;;  %s1338_s24 = sphi %s1399_s24, %s1685_s24   ;;  %s1334_s23 = sphi %s1397_s23, %s1681_s23   ;;  %s1330_s22 = sphi %s1395_s22, %s1684_s22   ;;  %s1326_s21 = sphi %s1393_s21, %s1683_s21  }
   0xe   : > { %1658 = sst [smem:[#allocation18_spill]] %s1334_s23  ;;  %s929_s28 = sadd.s32 4294967294, %s1346_s26  }
   0xf   : > { %1659 = sst [smem:[#allocation19_spill]] %s1346_s26  ;;  %p60_p0 = scmp.ne.s32.totalorder %s1330_s22, %s1326_s21 }
  0x10   : > { %p61_p1 = scmp.eq.s32.totalorder %s1424_s27, 0  ;;  %p201_p2 = scmp.eq.s32.totalorder %s1424_s27, 1 }
  0x11   : > { %p207_p3 = scmp.eq.s32.totalorder %s929_s28, 1  ;;  %p930_p5 = scmp.ge.s32.totalorder %s1346_s26, 1 }
  0x12   : > { %p1433_p4 = por %p61_p1, %p60_p0  ;;  %p214_p7 = scmp.lt.s32.totalorder %s1346_s26, 3 }
  0x13   : > { %p1438_p6 = por %p207_p3, %p60_p0  ;;  %s1663_s3 = sld [smem:[#allocation25_spill]] }
  0x14   : > { %p1446_p8 = pnand %p930_p5, %p214_p7  ;;  %s1348_s11 = smov [#allocation9]  }
  0x15   : > { %s1661_s30 = scalar_select %p1438_p6, 1, 0 }
  0x16   : > { %p989_p9 = pneg %p1446_p8  ;;  %s227_s12 = sshll.u32 %s1348_s11, 4  ;;  %s228_s12 = int_to_ptr.vmem [resolvable:$true] %s227_s12 }
  0x17   : > { %1662 = sst [smem:[#allocation20_spill]] %s1661_s30  ;;  %s1642_s14 = smov 128  }
  0x18   : > { %p1454_p10 = pnand %p989_p9, %p61_p1  ;;  %s1644_s15 = smov 8  }
  0x19   : > { %s225_s9 = sshll.u32 %s1663_s3, 4  ;;  %s38_s16 = sadd.s32 1, %s1342_s25  ;;  %s226_s9 = int_to_ptr.hbm [resolvable:$true] %s225_s9 }
  0x1a   : > { %992 = dma.hbm_to_vmem [thread:$0]  (!%p1454_p10), %s226_s9, 512, %s228_s12, [#allocation10], %s1642_s14, %s1642_s14, %s1644_s15  }
  0x1b   : > { %p40_p12 = scmp.ge.s32.totalorder %s38_s16, 2  ;;  %s47_s17 = sadd.s32 1, %s1334_s23 }
  0x1c   : > { %p54_p13 = scmp.ne.s32.totalorder %s1334_s23, %s1330_s22  ;;  %p55_p0 = scmp.eq.s32.totalorder %s1346_s26, 0 }
  0x1d   : > { %s1688_s16 = smov (%p40_p12, %s38_s16), 0  ;;  %p1012_p7 = scmp.lt.s32.totalorder %s1346_s26, 2 }
  0x1e   : > { %1666 = sst [smem:[#allocation21_spill]] %s1688_s16  ;;  %p56_p3 = por %p55_p0, %p54_p13 }
  0x1f   : > { %p1473_p5 = por %p201_p2, %p54_p13  ;;  %s42_s19 = ssub.s32 %s1342_s25, %s1688_s16 }
  0x20   : > { %p45_p9 = scmp.eq.s32.totalorder %s42_s19, 0  ;;  %s1481_s20 = sand.u32 1, %s1334_s23  }
  0x21   : > { %s1667_s18 = scalar_select %p1473_p5, 1, 0 }
  0x22   : > { %p1483_p11 = pnand %p1012_p7, %p56_p3  ;;  %s278_s7 = sand.u32 1, %s1346_s26  }
  0x23   : > { %1668 = sst [smem:[#allocation22_spill]] %s1667_s18  ;;  %s936_s9 = sshll.u32 %s1481_s20, 4 }
  0x24   : > { %s1489_s8 = scalar_select %p45_p9, %s1334_s23, %s47_s17  }
  0x25   : > { %s971_s11 = sshll.u32 %s1342_s25, 4  ;;  %s1671_s1 = sld [smem:[#allocation24_spill]] }
  0x26   : > { %1670 = sst [smem:[#allocation23_spill]] %s1489_s8  ;;  %s282_s16 = scalar_lea.vmem [#allocation6], %s936_s9 }
  0x27   : > { %s290_s19 = sshll.u32 %s282_s16, 4  ;;  %s279_s30 = scalar_lea.sflag [#allocation7], %s278_s7  ;;  %s291_s19 = int_to_ptr.vmem [resolvable:$true] %s290_s19 }
  0x28   : > { %s1672_s21 = smov 8   ;;  %s1673_s26 = smov 128  }
  0x29   : > { %s309_s23 = scalar_lea.hbm %s1637_s2, %s971_s11  ;;  %s304_s12 = scalar_lea.vmem [#allocation8], %s936_s9 }
  0x2a   : > { %s310_s14 = sshll.u32 %s309_s23, 4  ;;  %s239_s7 = sshll.u32 %s1639_s4, 4  ;;  %s311_s14 = int_to_ptr.hbm [resolvable:$true] %s310_s14  ;;  %s240_s7 = int_to_ptr.hbm [resolvable:$true] %s239_s7 }
  0x2b   : > { %s287_s15 = scalar_lea.hbm %s1671_s1, %s971_s11  ;;  %s1351_s5 = smov [#allocation11]  }
  0x2c   : > { %s288_s3 = sshll.u32 %s287_s15, 4  ;;  %s312_s15 = sshll.u32 %s304_s12, 4  ;;  %s289_s3 = int_to_ptr.hbm [resolvable:$true] %s288_s3  ;;  %s313_s15 = int_to_ptr.vmem [resolvable:$true] %s312_s15 }
  0x2d   : > { %1002 = dma.hbm_to_vmem [thread:$0]  (!%p1483_p11), %s289_s3, 256, %s291_s19, %s279_s30, %s1673_s26, %s1673_s26, %s1672_s21  }
  0x2e   : > { %s241_s18 = sshll.u32 %s1351_s5, 4  ;;  %s934_s3 = sshll.u32 %s1481_s20, 3  ;;  %s242_s18 = int_to_ptr.vmem [resolvable:$true] %s241_s18 }
  0x2f   : > { %995 = dma.hbm_to_vmem [thread:$0]  (!%p1454_p10), %s240_s7, 512, %s242_s18, [#allocation10], %s1673_s26, %s1673_s26, %s1672_s21  }
  0x30   : > { %s935_s23 = sshll.u32 %s1342_s25, 3  ;;  %s262_s1 = scalar_lea.vmem [#allocation3], %s934_s3 }
  0x31   : > { %s267_s11 = scalar_lea.hbm %s1635_s0, %s935_s23  ;;  %s271_s17 = sshll.u32 %s262_s1, 4  ;;  %s272_s17 = int_to_ptr.vmem [resolvable:$true] %s271_s17 }
  0x32   : > { %s269_s19 = sshll.u32 %s267_s11, 4  ;;  %s259_s12 = scalar_lea.sflag [#allocation4], %s1481_s20  ;;  %s270_s19 = int_to_ptr.hbm [resolvable:$true] %s269_s19 }
  0x33   : > { %999 = dma.hbm_to_vmem [thread:$0]  (!%p1483_p11), %s270_s19, 128, %s272_s17, %s259_s12  }
  0x34   : > { %1005 = dma.hbm_to_vmem [thread:$0]  (!%p1483_p11), %s311_s14, 256, %s313_s15, %s279_s30, %s1673_s26, %s1673_s26, %s1672_s21  }
  0x35   : > { %324 = sbr.rel (%p1446_p8) target bundleno = 1133 (0x46d), region = 44  ;;  %s1528_s5 = sand.u32 (!%p1446_p8), 1, %s1330_s22  }
  0x36   : > { %s943_s13 = sshll.u32 (!%p1446_p8), %s1528_s5, 3  ;;  %s327_s18 = scalar_lea.sflag (!%p1446_p8), [#allocation4], %s1528_s5 }
  0x37   : > { %s330_s20 = scalar_lea.vmem (!%p1446_p8), [#allocation3], %s943_s13 }
  0x3a   : > { %1309 = dma.done.wait (%p1433_p4), %s327_s18, 128  }
  0x3b   : > { %1311 = vsyncadd (%p1433_p4), %s327_s18, 4294967168  ;;  %s336_s21 = sand.u32 1, %s1424_s27   ;;  %s944_s26 = sshll.u32 %s1528_s5, 4 }
  0x3c   : > { %s337_s30 = scalar_lea.sflag [#allocation7], %s336_s21  ;;  %s340_s10 = scalar_lea.vmem [#allocation6], %s944_s26 }
  0x3d   : > { %1313 = dma.done.wait (%p1433_p4), %s337_s30, 512  }
  0x3e   : > { %1315 = vsyncadd (%p1433_p4), %s337_s30, 4294966784  ;;  %s1544_s28 = scalar_lea.vmem [#allocation8], %s944_s26 }
  0x3f   : > { %1317 = dma.done.wait (%p61_p1), [#allocation10], 1024  }
  0x40   : > { %1319 = vsyncadd (%p61_p1), [#allocation10], 4294966272  ;;  %vm434_vm0 = vcmask 64512   ;;  %v404_v0 = vld [vmem:[#allocation9 + $0x18] sm:$0xff]  ;;  %v403_v1 = vld [vmem:[#allocation9 + $0x10] sm:$0xff]  ;;  %s1352_s14 = smov 120  }
  0x41   : > { %421 = vmatpush.msra.mxu0 %v404_v0  ;;  %v431_v2 = vld [vmem:[%s340_s10 + $0x8] sm:$0xff]  ;;  %v430_v4 = vld [vmem:[%s340_s10] sm:$0xff]  ;;  %s1353_s29 = smov 104   ;;  %vm405_vm1 = vcmask 261120   ;;  %s1354_s27 = smov 112   ;;  %vm464_vm2 = vcmask 130048  }
  0x42   : > { %v402_v3 = vld [vmem:[#allocation9 + $0x8] sm:$0xff]  ;;  %504 = vrot.lane.b32.xlu0 %v431_v2, %s1352_s14  ;;  %950 = vmatpush.xpose.msk.msra.mxu1 %vm434_vm0, %v431_v2  ;;  %v401_v5 = vld [vmem:[#allocation9] sm:$0xff]  ;;  %v400_v6 = vld [vmem:[%s330_s20] sm:$0xff]  ;;  %s1355_s15 = smov 8   ;;  %s1356_s16 = smov 24   ;;  %vm578_vm3 = vcmask 130112  }
  0x43   : > { %422 = vmatpush.msra.mxu0 %v403_v1  ;;  %660 = vrot.lane.b32.xlu2 %v430_v4, %s1353_s29  ;;  %v433_v31 = vld [vmem:[%s1544_s28 + $0x8] sm:$0xff]  ;;  %v432_v32 = vld [vmem:[%s1544_s28] sm:$0xff]  ;;  %s1357_s7 = smov 16   ;;  %vm656_vm4 = vcmask 195712   ;;  %vm734_vm5 = vcmask 261312   ;;  %s968_s3 = sshll.u32 %s1338_s24, 3 }
  0x44   : > { %493 = vmatpush.msra.mxu2 %v433_v31  ;;  %v1084_v38 = vpack.i.bf16 %v432_v32, %v433_v31  ;;  %s781_s11 = scalar_lea.hbm %s1641_s6, %s968_s3  ;;  %s1675_s17 = sld [smem:[#allocation26_spill]] }
  0x45   : > { %423 = vmatpush.msra.mxu0 %v402_v3  ;;  %s399_s12 = scalar_lea.vmem [#allocation12], %s943_s13  ;;  %s785_s20 = sshll.u32 %s781_s11, 4  ;;  %s786_s20 = int_to_ptr.hbm [resolvable:$true] %s785_s20 }
  0x46   : > { %951 = vmatpush.xpose.msk.msra.mxu1 %vm434_vm0, %v430_v4  ;;  %494 = vmatpush.msra.mxu2 %v432_v32  ;;  %s783_s18 = sshll.u32 %s399_s12, 4  ;;  %s770_s24 = scalar_lea.sflag [#allocation5], %s1528_s5  ;;  %s784_s18 = int_to_ptr.vmem [resolvable:$true] %s783_s18 }
  0x47   : > { %424 = vmatpush.msra.mxu0 %v401_v5  ;;  %s1270_s21 = sshra.s32 %s786_s20, 4  ;;  %s1276_s13 = scalar_lea.hbm %s1641_s6, 16  ;;  %s1271_s21 = int_to_ptr.hbm [resolvable:$true] %s1270_s21 }
  0x48   : > { %949 = vmatmul.msk.f32.vlgmr.msra.gmra.mxu0 %vm405_vm1, %v400_v6  ;;  %s1272_s26 = scalar_lea.hbm %s1271_s21, 8  ;;  %p1277_p8 = scmp.lt.s32.totalorder %s1271_s21, %s1641_s6 }
  0x49   : > { %p1273_p1 = scmp.ne.s32.totalorder %s1271_s21, %s1272_s26  ;;  %p1278_p10 = scmp.lt.s32.totalorder %s1276_s13, %s1272_s26 }
  0x4a   : > { %502 = vrot.lane.b32.xlu0 %v430_v4, %s1352_s14 }
  0x4b   : > { %p1274_p2 = pnand %p1273_p1, %p1473_p5  ;;  %p1279_p11 = por %p1278_p10, %p1277_p8 }
  0x4d   : > { %p1275_p4 = pneg %p1274_p2 }
  0x4f   : > { %p1280_p12 = pnand %p1279_p11, %p1275_p4 }
  0x52   : > { %584 = vrot.lane.b32.xlu0 %v431_v2, %s1354_s27 }
  0x9d   : > { %v661_v12 = vpop.permute.xlu2 %660 }
  0xb4   : > { %v505_v9 = vpop.permute.xlu0 %504 }
  0xb5   : > { %954 = vmatpush.xpose.msk.msra.mxu3 %vm434_vm0, %v505_v9 }
  0xbc   : > { %v503_v10 = vpop.permute.xlu0 %502 }
  0xbd   : > { %955 = vmatpush.xpose.msk.msra.mxu3 %vm434_vm0, %v503_v10 }
  0xc4   : > { %v585_v11 = vpop.permute.xlu0 %584 }
  0xc5   : > { %v426_v7 = vpop.f32.mrf.mxu0  ;;  %958 = vmatpush.xpose.msk.msrb.mxu0 %vm434_vm0, %v585_v11  ;;  %v740_v11 = vld [vmem:[#allocation11 + $0x18] sm:$0xff] }
  0xc6   : > { %v429_v8 = vmul.f32 0.35355338, %v426_v7 }
  0xc8   : > { %658 = vrot.lane.b32.xlu2 %v429_v8, %s1353_s29  ;;  %500 = vrot.lane.b32.xlu1 %v429_v8, %s1352_s14 }
  0xc9   : > { %952 = vmatmul.msk.f32.vlgmr.msra.gmra.mxu1 %vm434_vm0, %v429_v8 }
  0xd0   : > { %580 = vrot.lane.b32.xlu2 %v429_v8, %s1354_s27  ;;  %662 = vrot.lane.b32.xlu1 %v431_v2, %s1353_s29 }
  0xd8   : > { %582 = vrot.lane.b32.xlu1 %v430_v4, %s1354_s27 }
 0x122   : > { %v659_v15 = vpop.permute.xlu2 %658 }
 0x12a   : > { %v581_v19 = vpop.permute.xlu2 %580 }
 0x13a   : > { %v501_v13 = vpop.permute.xlu1 %500 }
 0x13b   : > { %956 = vmatmul.msk.f32.vlgmr.msra.gmra.mxu3 %vm434_vm0, %v501_v13  ;;  %v738_v13 = vld [vmem:[#allocation11 + $0x8] sm:$0xff] }
 0x142   : > { %v663_v14 = vpop.permute.xlu1 %662 }
 0x143   : > { %962 = vmatpush.xpose.msk.msrb.mxu3 %vm434_vm0, %v663_v14  ;;  %v737_v14 = vld [vmem:[#allocation11] sm:$0xff] }
 0x146   : > { %v461_v16 = vpop.f32.mrf.mxu1 }
 0x147   : > { %963 = vmatpush.xpose.msk.msrb.mxu3 %vm434_vm0, %v661_v12  ;;  %v465_v17 = vsel %vm464_vm2, %v461_v16, -inf  ;;  %v739_v12 = vld [vmem:[#allocation11 + $0x10] sm:$0xff] }
 0x148   : > { %466 = vmax.xlane.f32.xlu0 %v465_v17 }
 0x14a   : > { %964 = vmatmul.msk.f32.vlgmr.msrb.gmra.mxu3 %vm434_vm0, %v659_v15  ;;  %v583_v18 = vpop.permute.xlu1 %582 }
 0x14b   : > { %959 = vmatpush.xpose.msk.msrb.mxu0 %vm434_vm0, %v583_v18  ;;  %v1089_v18 = vld [vmem:[%s1675_s17] ss:$0 sm:$0xff] }
 0x14e   : > { %960 = vmatmul.msk.f32.vlgmr.msrb.gmra.mxu0 %vm434_vm0, %v581_v19 }
 0x14f   : > { %760 = vmatpush.msra.mxu0 %v740_v11 }
 0x151   : > { %761 = vmatpush.msra.mxu0 %v739_v12 }
 0x153   : > { %762 = vmatpush.msra.mxu0 %v738_v13 }
 0x155   : > { %763 = vmatpush.msra.mxu0 %v737_v14 }
 0x1bb   : > { %v467_v20 = vpop.xlane.xlu0 %466 }
 0x1bc   : > { %v468_v21 = vsub.f32 %v461_v16, %v467_v20 }
 0x1be   : > { %v469_v22 = vmul.f32 1.442695, %v468_v21  ;;  %v529_v23 = vpop.f32.mrf.mxu3 }
 0x1bf   : > { %v532_v24 = vsel %vm464_vm2, %v529_v23, -inf }
 0x1c0   : > { %1090 = vpow2.f32 %v469_v22  ;;  %533 = vmax.xlane.f32.xlu1 %v532_v24 }
 0x1c6   : > { %v1091_v25 = vpop.eup %1090 }
 0x1c7   : > { %v471_v26 = vsel %vm464_vm2, %v1091_v25, 0.0 }
 0x1c8   : > { %472 = vadd.xlane.f32.xlu0 %v471_v26 }
 0x1cb   : > { %v609_v29 = vpop.f32.mrf.mxu0 }
 0x1cc   : > { %v612_v30 = vsel %vm464_vm2, %v609_v29, -inf }
 0x1cd   : > { %v687_v27 = vpop.f32.mrf.mxu3 }
 0x1ce   : > { %v690_v28 = vsel %vm464_vm2, %v687_v27, -inf }
 0x1cf   : > { %691 = vmax.xlane.f32.xlu2 %v690_v28 }
 0x1d7   : > { %613 = vmax.xlane.f32.xlu2 %v612_v30 }
 0x1ef   : > { %1075 = vrot.lane.b32.xlu2 %v1084_v38, %s1352_s14 }
 0x233   : > { %v534_v40 = vpop.xlane.xlu1 %533 }
 0x234   : > { %v535_v44 = vsub.f32 %v529_v23, %v534_v40 }
 0x236   : > { %v536_v47 = vmul.f32 1.442695, %v535_v44 }
 0x23b   : > { %v473_v33 = vpop.xlane.xlu0 %472 }
 0x23c   : > { %1092 = vrcp.f32 %v473_v33 }
 0x242   : > { %v1093_v34 = vpop.eup %1092  ;;  %v692_v35 = vpop.xlane.xlu2 %691 }
 0x243   : > { %v693_v36 = vsub.f32 %v687_v27, %v692_v35  ;;  %v475_v37 = vmul.f32 %v1093_v34, %v1091_v25 }
 0x245   : > { %v694_v39 = vmul.f32 1.442695, %v693_v36  ;;  %953 = vmatmul.msk.f32.vlgmr.msra.gmra.mxu2 %vm464_vm2, %v475_v37 }
 0x247   : > { %1094 = vpow2.f32 %v694_v39 }
 0x24a   : > { %v614_v41 = vpop.xlane.xlu2 %613 }
 0x24b   : > { %v615_v42 = vsub.f32 %v609_v29, %v614_v41 }
 0x24d   : > { %v1095_v43 = vpop.eup %1094  ;;  %v616_v45 = vmul.f32 1.442695, %v615_v42 }
 0x24e   : > { %v696_v46 = vsel %vm464_vm2, %v1095_v43, 0.0 }
 0x24f   : > { %1096 = vpow2.f32 %v616_v45  ;;  %697 = vadd.xlane.f32.xlu0 %v696_v46 }
 0x250   : > { %1098 = vpow2.f32 %v536_v47 }
 0x252   : > { %v1076_v52 = vpop.permute.xlu2 %1075 }
 0x253   : > { %v1077_v53 = vunpack.i.l.bf16 %v1076_v52  ;;  %v1078_v54 = vunpack.i.h.bf16 %v1076_v52 }
 0x255   : > { %v1097_v48 = vpop.eup %1096  ;;  %568 = vmatpush.msrb.mxu2 %v1077_v53 }
 0x256   : > { %v618_v49 = vsel %vm464_vm2, %v1097_v48, 0.0  ;;  %v1099_v50 = vpop.eup %1098 }
 0x257   : > { %619 = vadd.xlane.f32.xlu1 %v618_v49  ;;  %v538_v51 = vsel %vm464_vm2, %v1099_v50, 0.0  ;;  %569 = vmatpush.msrb.mxu2 %v1078_v54 }
 0x25f   : > { %539 = vadd.xlane.f32.xlu1 %v538_v51 }
 0x263   : > { %1080 = vrot.lane.b32.xlu0 %v1084_v38, %s1353_s29 }
 0x278   : > { %1085 = vrot.lane.b32.xlu1 %v1084_v38, %s1354_s27 }
 0x2c2   : > { %v698_v57 = vpop.xlane.xlu0 %697 }
 0x2c8   : > { %v496_v55 = vpop.f32.mrf.mxu2 }
 0x2c9   : > { %499 = vst.msk [vmem:[#allocation2] sm:$0xff] %vm434_vm0, %v496_v55 }
 0x2ca   : > { %v620_v56 = vpop.xlane.xlu1 %619 }
 0x2d2   : > { %v540_v58 = vpop.xlane.xlu1 %539 }
 0x2d3   : > { %1100 = vrcp.f32 %v540_v58 }
 0x2d4   : > { %1102 = vrcp.f32 %v698_v57 }
 0x2d5   : > { %v1081_v59 = vpop.permute.xlu0 %1080  ;;  %1104 = vrcp.f32 %v620_v56 }
 0x2d6   : > { %v1083_v60 = vunpack.i.h.bf16 %v1081_v59  ;;  %v1082_v61 = vunpack.i.l.bf16 %v1081_v59 }
 0x2d8   : > { %724 = vmatpush.msra.mxu2 %v1082_v61 }
 0x2d9   : > { %v1101_v62 = vpop.eup %1100 }
 0x2da   : > { %v542_v63 = vmul.f32 %v1101_v62, %v1099_v50  ;;  %725 = vmatpush.msra.mxu2 %v1083_v60  ;;  %v1103_v0 = vpop.eup %1102 }
 0x2db   : > { %v700_v1 = vmul.f32 %v1103_v0, %v1095_v43  ;;  %v1105_v3 = vpop.eup %1104 }
 0x2dc   : > { %957 = vmatmul.msk.f32.vlgmr.msrb.gmra.mxu2 %vm464_vm2, %v542_v63  ;;  %v622_v6 = vmul.f32 %v1105_v3, %v1097_v48 }
 0x2e4   : > { %965 = vmatmul.msk.f32.vlgmr.msra.gmra.mxu2 %vm464_vm2, %v700_v1 }
 0x2ea   : > { %v1086_v2 = vpop.permute.xlu1 %1085 }
 0x2eb   : > { %v1087_v4 = vunpack.i.l.bf16 %v1086_v2  ;;  %v1088_v5 = vunpack.i.h.bf16 %v1086_v2 }
 0x2ed   : > { %646 = vmatpush.msrb.mxu1 %v1087_v4 }
 0x2ef   : > { %647 = vmatpush.msrb.mxu1 %v1088_v5 }
 0x2f0   : > { %961 = vmatmul.msk.f32.vlgmr.msrb.gmra.mxu1 %vm464_vm2, %v622_v6 }
 0x35f   : > { %v571_v7 = vpop.f32.mrf.mxu2 }
 0x360   : > { %575 = vrot.lane.b32.xlu2 %v571_v7, %s1355_s15 }
 0x367   : > { %v727_v8 = vpop.f32.mrf.mxu2 }
 0x368   : > { %731 = vrot.lane.b32.xlu2 %v727_v8, %s1356_s16 }
 0x36d   : > { %v649_v9 = vpop.f32.mrf.mxu1 }
 0x36e   : > { %653 = vrot.lane.b32.xlu0 %v649_v9, %s1357_s7 }
 0x3ba   : > { %v576_v10 = vpop.permute.xlu2 %575 }
 0x3bb   : > { %579 = vst.msk [vmem:[#allocation2] sm:$0xff] %vm578_vm3, %v576_v10 }
 0x3c2   : > { %v732_v16 = vpop.permute.xlu2 %731 }
 0x3e0   : > { %v654_v15 = vpop.permute.xlu0 %653 }
 0x3e1   : > { %657 = vst.msk [vmem:[#allocation2] sm:$0xff] %vm656_vm4, %v654_v15 }
 0x3e2   : > { %735 = vst.msk [vmem:[#allocation2] sm:$0xff] %vm734_vm5, %v732_v16 }
 0x3e9   : > { %v736_v17 = vld [vmem:[#allocation2] sm:$0xff] }
 0x3ea   : > { %966 = vmatmul.msk.f32.vlgmr.msra.gmra.mxu0 %vm405_vm1, %v736_v17 }
 0x467   : > { %v765_v19 = vpop.f32.mrf.mxu0 }
 0x468   : > { %v766_v20 = vadd.f32 %v1089_v18, %v765_v19 }
 0x46a   : > { %768 = vst.msk [vmem:[%s399_s12] sm:$0xff] %vm405_vm1, %v766_v20 }
 0x46b   : > { %1283 = shalt.err (!%p1280_p12)
}
 0x46c   : > { %987 = dma.vmem_to_hbm [thread:$0]  (%p1473_p5), %s784_s18, 128, %s786_s20, %s770_s24  }
 0x46d PF: > { %s1676_s5 = sld [smem:[#allocation17_spill]] }
 0x46e   : > { %s1678_s27 = sld [smem:[#allocation19_spill]] }
 0x473   : > { %s797_s15 = sand.u32 1, %s1676_s5  }
 0x474   : > { %p1679_p13 = scmp.ge.s32.totalorder %s1678_s27, 2  ;;  %s798_s16 = scalar_lea.sflag [#allocation5], %s797_s15 }
 0x476   : > { %p1007_p0 = pnand %p1679_p13, %p1438_p6 }
 0x478   : > { %p1008_p3 = pneg %p1007_p0 }
 0x47a   : > { %1321 = dma.done.wait (%p1008_p3), %s798_s16, 128  }
 0x47b   : > { %1323 = vsyncadd (%p1008_p3), %s798_s16, 4294967168  ;;  %s26_s26 = sadd.s32 1, %s1678_s27   ;;  %s1680_s7 = sld [smem:[#allocation18_spill]] }
 0x47c   : > { %p23_p7 = scmp.ge.s32.totalorder %s26_s26, 4   ;;  %s1681_s23 = sld [smem:[#allocation23_spill]] }
 0x47d   : > { %s1682_s3 = sld [smem:[#allocation21_spill]]  ;;  %s1683_s21 = smov %s1330_s22 }
 0x47e   : > { %s1685_s24 = smov %s1342_s25 }
 0x47f   :  { %25 = sbr.rel (!%p23_p7) target bundleno = 13 (0xd), region = 121 }
 0x481   : > { %s1684_s22 = smov %s1680_s7 }
 0x483   : > { %s1686_s25 = smov %s1682_s3 }
 0x484   :  { %804 = vsyncpa [#allocation4], 1 }
 0x485   :  { %806 = vsyncpa [#allocation4 + $0x1], 1 }
 0x486   :  { %807 = vsyncpa [#allocation7], 1 }
 0x487   :  { %809 = vsyncpa [#allocation7 + $0x1], 1 }
 0x488   :  { %810 = vsyncpa [#allocation10], 1 }
 0x489   :  { %811 = vsyncpa [#allocation5], 1 }
 0x48a   :  { %813 = vsyncpa [#allocation5 + $0x1], 1 }

</bundles_post_ra>
